<compile_context>
chip_gen: v6e
topology: v6e:2x2x1
jax: 0.10.0
libtpu: 0.0.40
codegen_flags: <defaults>
</compile_context>

<pallas_src>
import functools

import jax
import jax.numpy as jnp
from jax import lax
from jax.experimental import pallas as pl
from jax.experimental.pallas import tpu as pltpu


def _round_up(x: int, m: int) -> int:
    return (x + m - 1) // m * m


def _rps_kernel(pts_ref, mask_ref, bits_ref, tgt_ref, out_ref, *,
                n_points: int, n_total: int, idx_bits: int,
                slab_rows: int, p_pad: int):
    """One batch element per grid step.

    pts_ref : (1, C, N_pad)     lane-dense points
    mask_ref: (1, 1, N_pad)     int32 validity mask (coordinate-sum != 0), from the wrapper
    bits_ref: (1, 1, N_pad)     int32 random key bits ((31 - idx_bits) bits used per point)
    tgt_ref : (1, P_pad, 1)     int32 target rank per output row (iota for the
                                without-replacement path, randint ranks for the
                                with-replacement path, -2 for padded rows / empty clouds)
    out_ref : (1, C, P_pad)
    """
    sentinel = 2 ** 31 - 1                                     # > every real key

    P = pts_ref[0].astype(jnp.float32)                         # (C, N_pad)
    valid = mask_ref[0] != 0                                   # (1, N_pad)
    lane = lax.broadcasted_iota(jnp.int32, (1, n_total), 1)    # (1, N_pad)

    # Composite keys: unique per point (lane index in the low bits), random high bits using
    # every available int32 bit.  Invalid (zero-sum / padding) points get the sentinel so
    # they can never be selected.
    keys = jnp.where(valid,
                     jnp.left_shift(bits_ref[0], idx_bits) | lane,
                     sentinel)

    # ---- threshold selection (replaces the serial per-pick argmin chain) -------------------
    # Binary-search the n_points-th smallest key: 32 full-lane compare+count passes, cost
    # independent of n_points.  Keys are unique, so count(keys <= T) == n_points exactly when
    # at least n_points points are valid.  With fewer valid points the count never reaches
    # n_points, the threshold saturates, and `selected` degenerates to `valid`
    # (the with-replacement path).  All scalars are kept as (1, 1) vectors.
    lo, hi = 0, 2 ** 31 - 2
    for _ in range(32):
        mid = lo + ((hi - lo) >> 1)
        cnt = jnp.sum(jnp.where(keys <= mid, 1, 0), axis=1, keepdims=True)   # (1, 1)
        take = cnt >= n_points                                               # (1, 1)
        lo, hi = jnp.where(take, lo, mid + 1), jnp.where(take, mid, hi)
    selected = jnp.logical_and(keys <= hi, valid)              # (1, N_pad)

    # ---- rank among selected lanes: log-step inclusive prefix sum along lanes --------------
    # TODO(synk): a pltpu.roll-based shift would keep these shifts in the XLU slot.
    csum = selected.astype(jnp.int32)
    s = 1
    while s < n_total:
        shifted = jnp.concatenate(
            [jnp.zeros((1, s), jnp.int32), csum[:, : n_total - s]], axis=1)
        csum = csum + shifted
        s *= 2
    rank = jnp.where(selected, csum - 1, -1)                   # (1, N_pad); -1 never matched

    # ---- gather via MXU, in lane-dense slabs (bounds VMEM; no (P_pad, N_pad) scratch) ------
    n_slabs = p_pad // slab_rows
    for si in range(n_slabs):
        base = si * slab_rows
        tgt_slab = tgt_ref[0, pl.ds(base, slab_rows), :]       # (slab_rows, 1) int32
        s_slab = (tgt_slab == rank).astype(jnp.float32)        # (slab_rows, N_pad) one-hot rows
        o = lax.dot_general(P, s_slab, (((1,), (1,)), ((), ())),
                            preferred_element_type=jnp.float32)  # (C, slab_rows)
        out_ref[0, :, pl.ds(base, slab_rows)] = o.astype(out_ref.dtype)


def random_point_sampling(pred_cloud, partial_cloud=None, *, n_points: int, seed: int = 0):
    """JAX/Pallas equivalent of RandomPointSampling.forward. Returns (B, n_points, C)."""
    if partial_cloud is not None:
        pred_cloud = jnp.concatenate([partial_cloud, pred_cloud], axis=1)
        # TODO(synk): on v5e, pass partial/pred as two kernel inputs over disjoint lane ranges
        #             (and a pre-transposed layout) to avoid these extra wrapper HBM passes.
    B, N, C = pred_cloud.shape

    n_pad = _round_up(N, 128)            # lane-dense point axis
    p_pad = _round_up(n_points, 128)     # lane-dense output axis -> unmasked full-width stores

    # Validity (matches torch .ne(0) on the coordinate sum); computed ONCE and shared with the
    # kernel so wrapper routing and in-kernel masking can never disagree.
    valid = jnp.sum(pred_cloud, axis=2) != 0                   # (B, N)
    n_valid = jnp.sum(valid, axis=1).astype(jnp.int32)         # (B,)

    pts_t = jnp.transpose(pred_cloud, (0, 2, 1))               # (B, C, N)
    if n_pad != N:
        pts_t = jnp.pad(pts_t, ((0, 0), (0, 0), (0, n_pad - N)))
        valid = jnp.pad(valid, ((0, 0), (0, n_pad - N)))       # zero-padding points are invalid
    mask = valid.astype(jnp.int32)[:, None, :]                 # (B, 1, n_pad)

    # Composite-key random bits: every int32 bit above the lane-index field is random.
    idx_bits = max(1, (n_pad - 1).bit_length())
    # TODO(synk): for clouds beyond ~2^24 points switch to a two-word key.
    ka, kb = jax.random.split(jax.random.PRNGKey(seed))
    bits = jax.random.randint(ka, (B, 1, n_pad), 0,
                              (1 << (31 - idx_bits)) - 1, dtype=jnp.int32)

    # Per-output-row target ranks (wrapper-side, not in-kernel):
    #   n_valid >= n_points : without replacement -> row j takes the j-th selected lane
    #   n_valid <  n_points : with replacement    -> row j takes the valid point of rank r[j]
    #   n_valid == 0        : torch raises; here target -2 matches nothing -> zero rows
    u = jax.random.uniform(kb, (B, n_points), jnp.float32)
    nv_f = jnp.maximum(n_valid.astype(jnp.float32), 1.0)[:, None]
    r = jnp.clip(jnp.floor(u * nv_f), 0.0, nv_f - 1.0).astype(jnp.int32)    # (B, n_points)
    iota = jnp.arange(n_points, dtype=jnp.int32)[None, :]
    tgt = jnp.where((n_valid >= n_points)[:, None], iota,
                    jnp.where((n_valid > 0)[:, None], r, -2))
    tgt = jnp.pad(tgt, ((0, 0), (0, p_pad - n_points)), constant_values=-2)
    tgt = tgt[:, :, None]                                                   # (B, p_pad, 1)

    # One-hot slab size (bounds VMEM: slab value <= 4 MiB; portable to v7x's 64 MiB VMEM).
    slab_rows = 256 if (p_pad % 256 == 0 and n_pad * 256 * 4 <= (4 << 20)) else 128

    kernel = functools.partial(_rps_kernel, n_points=n_points, n_total=n_pad,
                               idx_bits=idx_bits, slab_rows=slab_rows, p_pad=p_pad)

    # Explicit VMEM budget: double-buffered in/out blocks + one selection slab + temporaries.
    vmem_needed = (
        2 * (3 * 8 * n_pad * 4 + p_pad * 128 * 4 + 8 * p_pad * 4)
        + slab_rows * n_pad * 4
        + 12 * 8 * n_pad * 4)
    vmem_limit = min(64 << 20, max(16 << 20, int(vmem_needed * 1.5) + (2 << 20)))

    out_t = pl.pallas_call(
        kernel,
        out_shape=jax.ShapeDtypeStruct((B, C, p_pad), pred_cloud.dtype),
        grid=(B,),
        in_specs=[
            pl.BlockSpec((1, C, n_pad), lambda b: (b, 0, 0)),      # points (lane-dense)
            pl.BlockSpec((1, 1, n_pad), lambda b: (b, 0, 0)),      # validity mask
            pl.BlockSpec((1, 1, n_pad), lambda b: (b, 0, 0)),      # random key bits
            pl.BlockSpec((1, p_pad, 1), lambda b: (b, 0, 0)),      # per-row target ranks
        ],
        out_specs=pl.BlockSpec((1, C, p_pad), lambda b: (b, 0, 0)),
        compiler_params=pltpu.CompilerParams(
            dimension_semantics=("parallel",),       # batches independent -> both v7x TCs
            vmem_limit_bytes=vmem_limit),
    )(pts_t, mask, bits, tgt)

    return jnp.transpose(out_t, (0, 2, 1))[:, :n_points, :]       # (B, n_points, C)


if __name__ == "__main__":
    key = jax.random.PRNGKey(0)
    k1, k2 = jax.random.split(key)

    B, N_pred, N_part, C = 2, 48, 16, 3
    n_points = 32

    pred = jax.random.normal(k1, (B, N_pred, C), jnp.float32)
    partial = jax.random.normal(k2, (B, N_part, C), jnp.float32)

    # batch 0: a few zero rows -> 56 valid points  (>= n_points -> without replacement)
    pred = pred.at[0, :8].set(0.0)
    # batch 1: only 8 valid points                 (<  n_points -> with replacement)
    pred = pred.at[1, :].set(0.0)
    partial = partial.at[1, 8:].set(0.0)

    out = random_point_sampling(pred, partial, n_points=n_points, seed=0)
    out = jax.block_until_ready(out)

    assert out.shape == (B, n_points, C) and out.dtype == jnp.float32

    # every sampled point must be a non-zero-sum point taken from the concatenated input
    full = jnp.concatenate([partial, pred], axis=1)
    d = jnp.min(jnp.sum((out[:, :, None, :] - full[:, None, :, :]) ** 2, axis=-1), axis=-1)
    assert bool(jnp.all(d < 1e-3))
    assert bool(jnp.all(jnp.abs(jnp.sum(out, axis=-1)) > 0.0))

    # batch 0 used the without-replacement path -> all sampled points are distinct
    d00 = jnp.sum((out[0][:, None, :] - out[0][None, :, :]) ** 2, axis=-1)
    assert int(jnp.sum(d00 < 1e-9)) == n_points  # only the diagonal is zero

    print("KERNEL_OK")
</pallas_src>

<mosaic_0001>
module attributes {stable_mosaic.version = 11 : i64} {
  func.func @_rps_kernel(%arg0: i32, %arg1: memref<1x3x128xf32, #tpu.memory_space<vmem>>, %arg2: memref<1x1x128xi32, #tpu.memory_space<vmem>>, %arg3: memref<1x1x128xi32, #tpu.memory_space<vmem>>, %arg4: memref<1x128x1xi32, #tpu.memory_space<vmem>>, %arg5: memref<1x3x128xf32, #tpu.memory_space<vmem>>) attributes {dimension_semantics = [#tpu.dimension_semantics<parallel>], iteration_bounds = array<i64: 2>, scalar_prefetch = 0 : i64, scratch_operands = 0 : i64, tpu.core_type = #tpu.core_type<tc>, window_params = [{transform_indices = @transform_0, window_bounds = array<i64: 1, 3, 128>}, {transform_indices = @transform_1, window_bounds = array<i64: 1, 1, 128>}, {transform_indices = @transform_2, window_bounds = array<i64: 1, 1, 128>}, {transform_indices = @transform_3, window_bounds = array<i64: 1, 128, 1>}, {transform_indices = @transform_4, window_bounds = array<i64: 1, 3, 128>}]} {
    %c0 = arith.constant 0 : index
    %c0_0 = arith.constant 0 : index
    %c0_1 = arith.constant 0 : index
    %0 = vector.load %arg1[%c0, %c0_0, %c0_1] : memref<1x3x128xf32, #tpu.memory_space<vmem>>, vector<1x3x128xf32>
    %1 = vector.shape_cast %0 : vector<1x3x128xf32> to vector<3x128xf32>
    %c0_2 = arith.constant 0 : index
    %c0_3 = arith.constant 0 : index
    %c0_4 = arith.constant 0 : index
    %2 = vector.load %arg2[%c0_2, %c0_3, %c0_4] : memref<1x1x128xi32, #tpu.memory_space<vmem>>, vector<1x1x128xi32>
    %3 = vector.shape_cast %2 : vector<1x1x128xi32> to vector<1x128xi32>
    %c0_i32 = arith.constant 0 : i32
    %4 = vector.broadcast %c0_i32 : i32 to vector<1x128xi32>
    %5 = arith.cmpi ne, %3, %4 : vector<1x128xi32>
    %6 = tpu.iota {dimensions = array<i32: 1>} : vector<1x128xi32>
    %c0_5 = arith.constant 0 : index
    %c0_6 = arith.constant 0 : index
    %c0_7 = arith.constant 0 : index
    %7 = vector.load %arg3[%c0_5, %c0_6, %c0_7] : memref<1x1x128xi32, #tpu.memory_space<vmem>>, vector<1x1x128xi32>
    %8 = vector.shape_cast %7 : vector<1x1x128xi32> to vector<1x128xi32>
    %c7_i32 = arith.constant 7 : i32
    %9 = vector.broadcast %c7_i32 : i32 to vector<1x128xi32>
    %10 = arith.shli %8, %9 : vector<1x128xi32>
    %11 = arith.ori %10, %6 : vector<1x128xi32>
    %c2147483647_i32 = arith.constant 2147483647 : i32
    %12 = vector.broadcast %c2147483647_i32 : i32 to vector<1x128xi32>
    %13 = arith.select %5, %11, %12 : vector<1x128xi1>, vector<1x128xi32>
    %c1073741823_i32 = arith.constant 1073741823 : i32
    %14 = vector.broadcast %c1073741823_i32 : i32 to vector<1x128xi32>
    %15 = arith.cmpi sle, %13, %14 : vector<1x128xi32>
    %c1_i32 = arith.constant 1 : i32
    %c0_i32_8 = arith.constant 0 : i32
    %16 = vector.broadcast %c1_i32 : i32 to vector<1x128xi32>
    %17 = vector.broadcast %c0_i32_8 : i32 to vector<1x128xi32>
    %18 = arith.select %15, %16, %17 : vector<1x128xi1>, vector<1x128xi32>
    %cst = arith.constant dense<0> : vector<1xi32>
    %19 = vector.multi_reduction <add>, %18, %cst [1] : vector<1x128xi32> to vector<1xi32>
    %20 = vector.shape_cast %19 : vector<1xi32> to vector<1x1xi32>
    %c32_i32 = arith.constant 32 : i32
    %21 = vector.broadcast %c32_i32 : i32 to vector<1x1xi32>
    %22 = arith.cmpi sge, %20, %21 : vector<1x1xi32>
    %c0_i32_9 = arith.constant 0 : i32
    %c1073741824_i32 = arith.constant 1073741824 : i32
    %23 = vector.broadcast %c0_i32_9 : i32 to vector<1x1xi32>
    %24 = vector.broadcast %c1073741824_i32 : i32 to vector<1x1xi32>
    %25 = arith.select %22, %23, %24 : vector<1x1xi1>, vector<1x1xi32>
    %c1073741823_i32_10 = arith.constant 1073741823 : i32
    %c2147483646_i32 = arith.constant 2147483646 : i32
    %26 = vector.broadcast %c1073741823_i32_10 : i32 to vector<1x1xi32>
    %27 = vector.broadcast %c2147483646_i32 : i32 to vector<1x1xi32>
    %28 = arith.select %22, %26, %27 : vector<1x1xi1>, vector<1x1xi32>
    %29 = arith.subi %28, %25 : vector<1x1xi32>
    %c1_i32_11 = arith.constant 1 : i32
    %30 = vector.broadcast %c1_i32_11 : i32 to vector<1x1xi32>
    %31 = arith.shrsi %29, %30 : vector<1x1xi32>
    %32 = arith.addi %25, %31 : vector<1x1xi32>
    %33 = vector.broadcast %32 : vector<1x1xi32> to vector<1x128xi32>
    %34 = arith.cmpi sle, %13, %33 : vector<1x128xi32>
    %c1_i32_12 = arith.constant 1 : i32
    %c0_i32_13 = arith.constant 0 : i32
    %35 = vector.broadcast %c1_i32_12 : i32 to vector<1x128xi32>
    %36 = vector.broadcast %c0_i32_13 : i32 to vector<1x128xi32>
    %37 = arith.select %34, %35, %36 : vector<1x128xi1>, vector<1x128xi32>
    %cst_14 = arith.constant dense<0> : vector<1xi32>
    %38 = vector.multi_reduction <add>, %37, %cst_14 [1] : vector<1x128xi32> to vector<1xi32>
    %39 = vector.shape_cast %38 : vector<1xi32> to vector<1x1xi32>
    %c32_i32_15 = arith.constant 32 : i32
    %40 = vector.broadcast %c32_i32_15 : i32 to vector<1x1xi32>
    %41 = arith.cmpi sge, %39, %40 : vector<1x1xi32>
    %c1_i32_16 = arith.constant 1 : i32
    %42 = vector.broadcast %c1_i32_16 : i32 to vector<1x1xi32>
    %43 = arith.addi %32, %42 : vector<1x1xi32>
    %44 = arith.select %41, %25, %43 : vector<1x1xi1>, vector<1x1xi32>
    %45 = arith.select %41, %32, %28 : vector<1x1xi1>, vector<1x1xi32>
    %46 = arith.subi %45, %44 : vector<1x1xi32>
    %c1_i32_17 = arith.constant 1 : i32
    %47 = vector.broadcast %c1_i32_17 : i32 to vector<1x1xi32>
    %48 = arith.shrsi %46, %47 : vector<1x1xi32>
    %49 = arith.addi %44, %48 : vector<1x1xi32>
    %50 = vector.broadcast %49 : vector<1x1xi32> to vector<1x128xi32>
    %51 = arith.cmpi sle, %13, %50 : vector<1x128xi32>
    %c1_i32_18 = arith.constant 1 : i32
    %c0_i32_19 = arith.constant 0 : i32
    %52 = vector.broadcast %c1_i32_18 : i32 to vector<1x128xi32>
    %53 = vector.broadcast %c0_i32_19 : i32 to vector<1x128xi32>
    %54 = arith.select %51, %52, %53 : vector<1x128xi1>, vector<1x128xi32>
    %cst_20 = arith.constant dense<0> : vector<1xi32>
    %55 = vector.multi_reduction <add>, %54, %cst_20 [1] : vector<1x128xi32> to vector<1xi32>
    %56 = vector.shape_cast %55 : vector<1xi32> to vector<1x1xi32>
    %c32_i32_21 = arith.constant 32 : i32
    %57 = vector.broadcast %c32_i32_21 : i32 to vector<1x1xi32>
    %58 = arith.cmpi sge, %56, %57 : vector<1x1xi32>
    %c1_i32_22 = arith.constant 1 : i32
    %59 = vector.broadcast %c1_i32_22 : i32 to vector<1x1xi32>
    %60 = arith.addi %49, %59 : vector<1x1xi32>
    %61 = arith.select %58, %44, %60 : vector<1x1xi1>, vector<1x1xi32>
    %62 = arith.select %58, %49, %45 : vector<1x1xi1>, vector<1x1xi32>
    %63 = arith.subi %62, %61 : vector<1x1xi32>
    %c1_i32_23 = arith.constant 1 : i32
    %64 = vector.broadcast %c1_i32_23 : i32 to vector<1x1xi32>
    %65 = arith.shrsi %63, %64 : vector<1x1xi32>
    %66 = arith.addi %61, %65 : vector<1x1xi32>
    %67 = vector.broadcast %66 : vector<1x1xi32> to vector<1x128xi32>
    %68 = arith.cmpi sle, %13, %67 : vector<1x128xi32>
    %c1_i32_24 = arith.constant 1 : i32
    %c0_i32_25 = arith.constant 0 : i32
    %69 = vector.broadcast %c1_i32_24 : i32 to vector<1x128xi32>
    %70 = vector.broadcast %c0_i32_25 : i32 to vector<1x128xi32>
    %71 = arith.select %68, %69, %70 : vector<1x128xi1>, vector<1x128xi32>
    %cst_26 = arith.constant dense<0> : vector<1xi32>
    %72 = vector.multi_reduction <add>, %71, %cst_26 [1] : vector<1x128xi32> to vector<1xi32>
    %73 = vector.shape_cast %72 : vector<1xi32> to vector<1x1xi32>
    %c32_i32_27 = arith.constant 32 : i32
    %74 = vector.broadcast %c32_i32_27 : i32 to vector<1x1xi32>
    %75 = arith.cmpi sge, %73, %74 : vector<1x1xi32>
    %c1_i32_28 = arith.constant 1 : i32
    %76 = vector.broadcast %c1_i32_28 : i32 to vector<1x1xi32>
    %77 = arith.addi %66, %76 : vector<1x1xi32>
    %78 = arith.select %75, %61, %77 : vector<1x1xi1>, vector<1x1xi32>
    %79 = arith.select %75, %66, %62 : vector<1x1xi1>, vector<1x1xi32>
    %80 = arith.subi %79, %78 : vector<1x1xi32>
    %c1_i32_29 = arith.constant 1 : i32
    %81 = vector.broadcast %c1_i32_29 : i32 to vector<1x1xi32>
    %82 = arith.shrsi %80, %81 : vector<1x1xi32>
    %83 = arith.addi %78, %82 : vector<1x1xi32>
    %84 = vector.broadcast %83 : vector<1x1xi32> to vector<1x128xi32>
    %85 = arith.cmpi sle, %13, %84 : vector<1x128xi32>
    %c1_i32_30 = arith.constant 1 : i32
    %c0_i32_31 = arith.constant 0 : i32
    %86 = vector.broadcast %c1_i32_30 : i32 to vector<1x128xi32>
    %87 = vector.broadcast %c0_i32_31 : i32 to vector<1x128xi32>
    %88 = arith.select %85, %86, %87 : vector<1x128xi1>, vector<1x128xi32>
    %cst_32 = arith.constant dense<0> : vector<1xi32>
    %89 = vector.multi_reduction <add>, %88, %cst_32 [1] : vector<1x128xi32> to vector<1xi32>
    %90 = vector.shape_cast %89 : vector<1xi32> to vector<1x1xi32>
    %c32_i32_33 = arith.constant 32 : i32
    %91 = vector.broadcast %c32_i32_33 : i32 to vector<1x1xi32>
    %92 = arith.cmpi sge, %90, %91 : vector<1x1xi32>
    %c1_i32_34 = arith.constant 1 : i32
    %93 = vector.broadcast %c1_i32_34 : i32 to vector<1x1xi32>
    %94 = arith.addi %83, %93 : vector<1x1xi32>
    %95 = arith.select %92, %78, %94 : vector<1x1xi1>, vector<1x1xi32>
    %96 = arith.select %92, %83, %79 : vector<1x1xi1>, vector<1x1xi32>
    %97 = arith.subi %96, %95 : vector<1x1xi32>
    %c1_i32_35 = arith.constant 1 : i32
    %98 = vector.broadcast %c1_i32_35 : i32 to vector<1x1xi32>
    %99 = arith.shrsi %97, %98 : vector<1x1xi32>
    %100 = arith.addi %95, %99 : vector<1x1xi32>
    %101 = vector.broadcast %100 : vector<1x1xi32> to vector<1x128xi32>
    %102 = arith.cmpi sle, %13, %101 : vector<1x128xi32>
    %c1_i32_36 = arith.constant 1 : i32
    %c0_i32_37 = arith.constant 0 : i32
    %103 = vector.broadcast %c1_i32_36 : i32 to vector<1x128xi32>
    %104 = vector.broadcast %c0_i32_37 : i32 to vector<1x128xi32>
    %105 = arith.select %102, %103, %104 : vector<1x128xi1>, vector<1x128xi32>
    %cst_38 = arith.constant dense<0> : vector<1xi32>
    %106 = vector.multi_reduction <add>, %105, %cst_38 [1] : vector<1x128xi32> to vector<1xi32>
    %107 = vector.shape_cast %106 : vector<1xi32> to vector<1x1xi32>
    %c32_i32_39 = arith.constant 32 : i32
    %108 = vector.broadcast %c32_i32_39 : i32 to vector<1x1xi32>
    %109 = arith.cmpi sge, %107, %108 : vector<1x1xi32>
    %c1_i32_40 = arith.constant 1 : i32
    %110 = vector.broadcast %c1_i32_40 : i32 to vector<1x1xi32>
    %111 = arith.addi %100, %110 : vector<1x1xi32>
    %112 = arith.select %109, %95, %111 : vector<1x1xi1>, vector<1x1xi32>
    %113 = arith.select %109, %100, %96 : vector<1x1xi1>, vector<1x1xi32>
    %114 = arith.subi %113, %112 : vector<1x1xi32>
    %c1_i32_41 = arith.constant 1 : i32
    %115 = vector.broadcast %c1_i32_41 : i32 to vector<1x1xi32>
    %116 = arith.shrsi %114, %115 : vector<1x1xi32>
    %117 = arith.addi %112, %116 : vector<1x1xi32>
    %118 = vector.broadcast %117 : vector<1x1xi32> to vector<1x128xi32>
    %119 = arith.cmpi sle, %13, %118 : vector<1x128xi32>
    %c1_i32_42 = arith.constant 1 : i32
    %c0_i32_43 = arith.constant 0 : i32
    %120 = vector.broadcast %c1_i32_42 : i32 to vector<1x128xi32>
    %121 = vector.broadcast %c0_i32_43 : i32 to vector<1x128xi32>
    %122 = arith.select %119, %120, %121 : vector<1x128xi1>, vector<1x128xi32>
    %cst_44 = arith.constant dense<0> : vector<1xi32>
    %123 = vector.multi_reduction <add>, %122, %cst_44 [1] : vector<1x128xi32> to vector<1xi32>
    %124 = vector.shape_cast %123 : vector<1xi32> to vector<1x1xi32>
    %c32_i32_45 = arith.constant 32 : i32
    %125 = vector.broadcast %c32_i32_45 : i32 to vector<1x1xi32>
    %126 = arith.cmpi sge, %124, %125 : vector<1x1xi32>
    %c1_i32_46 = arith.constant 1 : i32
    %127 = vector.broadcast %c1_i32_46 : i32 to vector<1x1xi32>
    %128 = arith.addi %117, %127 : vector<1x1xi32>
    %129 = arith.select %126, %112, %128 : vector<1x1xi1>, vector<1x1xi32>
    %130 = arith.select %126, %117, %113 : vector<1x1xi1>, vector<1x1xi32>
    %131 = arith.subi %130, %129 : vector<1x1xi32>
    %c1_i32_47 = arith.constant 1 : i32
    %132 = vector.broadcast %c1_i32_47 : i32 to vector<1x1xi32>
    %133 = arith.shrsi %131, %132 : vector<1x1xi32>
    %134 = arith.addi %129, %133 : vector<1x1xi32>
    %135 = vector.broadcast %134 : vector<1x1xi32> to vector<1x128xi32>
    %136 = arith.cmpi sle, %13, %135 : vector<1x128xi32>
    %c1_i32_48 = arith.constant 1 : i32
    %c0_i32_49 = arith.constant 0 : i32
    %137 = vector.broadcast %c1_i32_48 : i32 to vector<1x128xi32>
    %138 = vector.broadcast %c0_i32_49 : i32 to vector<1x128xi32>
    %139 = arith.select %136, %137, %138 : vector<1x128xi1>, vector<1x128xi32>
    %cst_50 = arith.constant dense<0> : vector<1xi32>
    %140 = vector.multi_reduction <add>, %139, %cst_50 [1] : vector<1x128xi32> to vector<1xi32>
    %141 = vector.shape_cast %140 : vector<1xi32> to vector<1x1xi32>
    %c32_i32_51 = arith.constant 32 : i32
    %142 = vector.broadcast %c32_i32_51 : i32 to vector<1x1xi32>
    %143 = arith.cmpi sge, %141, %142 : vector<1x1xi32>
    %c1_i32_52 = arith.constant 1 : i32
    %144 = vector.broadcast %c1_i32_52 : i32 to vector<1x1xi32>
    %145 = arith.addi %134, %144 : vector<1x1xi32>
    %146 = arith.select %143, %129, %145 : vector<1x1xi1>, vector<1x1xi32>
    %147 = arith.select %143, %134, %130 : vector<1x1xi1>, vector<1x1xi32>
    %148 = arith.subi %147, %146 : vector<1x1xi32>
    %c1_i32_53 = arith.constant 1 : i32
    %149 = vector.broadcast %c1_i32_53 : i32 to vector<1x1xi32>
    %150 = arith.shrsi %148, %149 : vector<1x1xi32>
    %151 = arith.addi %146, %150 : vector<1x1xi32>
    %152 = vector.broadcast %151 : vector<1x1xi32> to vector<1x128xi32>
    %153 = arith.cmpi sle, %13, %152 : vector<1x128xi32>
    %c1_i32_54 = arith.constant 1 : i32
    %c0_i32_55 = arith.constant 0 : i32
    %154 = vector.broadcast %c1_i32_54 : i32 to vector<1x128xi32>
    %155 = vector.broadcast %c0_i32_55 : i32 to vector<1x128xi32>
    %156 = arith.select %153, %154, %155 : vector<1x128xi1>, vector<1x128xi32>
    %cst_56 = arith.constant dense<0> : vector<1xi32>
    %157 = vector.multi_reduction <add>, %156, %cst_56 [1] : vector<1x128xi32> to vector<1xi32>
    %158 = vector.shape_cast %157 : vector<1xi32> to vector<1x1xi32>
    %c32_i32_57 = arith.constant 32 : i32
    %159 = vector.broadcast %c32_i32_57 : i32 to vector<1x1xi32>
    %160 = arith.cmpi sge, %158, %159 : vector<1x1xi32>
    %c1_i32_58 = arith.constant 1 : i32
    %161 = vector.broadcast %c1_i32_58 : i32 to vector<1x1xi32>
    %162 = arith.addi %151, %161 : vector<1x1xi32>
    %163 = arith.select %160, %146, %162 : vector<1x1xi1>, vector<1x1xi32>
    %164 = arith.select %160, %151, %147 : vector<1x1xi1>, vector<1x1xi32>
    %165 = arith.subi %164, %163 : vector<1x1xi32>
    %c1_i32_59 = arith.constant 1 : i32
    %166 = vector.broadcast %c1_i32_59 : i32 to vector<1x1xi32>
    %167 = arith.shrsi %165, %166 : vector<1x1xi32>
    %168 = arith.addi %163, %167 : vector<1x1xi32>
    %169 = vector.broadcast %168 : vector<1x1xi32> to vector<1x128xi32>
    %170 = arith.cmpi sle, %13, %169 : vector<1x128xi32>
    %c1_i32_60 = arith.constant 1 : i32
    %c0_i32_61 = arith.constant 0 : i32
    %171 = vector.broadcast %c1_i32_60 : i32 to vector<1x128xi32>
    %172 = vector.broadcast %c0_i32_61 : i32 to vector<1x128xi32>
    %173 = arith.select %170, %171, %172 : vector<1x128xi1>, vector<1x128xi32>
    %cst_62 = arith.constant dense<0> : vector<1xi32>
    %174 = vector.multi_reduction <add>, %173, %cst_62 [1] : vector<1x128xi32> to vector<1xi32>
    %175 = vector.shape_cast %174 : vector<1xi32> to vector<1x1xi32>
    %c32_i32_63 = arith.constant 32 : i32
    %176 = vector.broadcast %c32_i32_63 : i32 to vector<1x1xi32>
    %177 = arith.cmpi sge, %175, %176 : vector<1x1xi32>
    %c1_i32_64 = arith.constant 1 : i32
    %178 = vector.broadcast %c1_i32_64 : i32 to vector<1x1xi32>
    %179 = arith.addi %168, %178 : vector<1x1xi32>
    %180 = arith.select %177, %163, %179 : vector<1x1xi1>, vector<1x1xi32>
    %181 = arith.select %177, %168, %164 : vector<1x1xi1>, vector<1x1xi32>
    %182 = arith.subi %181, %180 : vector<1x1xi32>
    %c1_i32_65 = arith.constant 1 : i32
    %183 = vector.broadcast %c1_i32_65 : i32 to vector<1x1xi32>
    %184 = arith.shrsi %182, %183 : vector<1x1xi32>
    %185 = arith.addi %180, %184 : vector<1x1xi32>
    %186 = vector.broadcast %185 : vector<1x1xi32> to vector<1x128xi32>
    %187 = arith.cmpi sle, %13, %186 : vector<1x128xi32>
    %c1_i32_66 = arith.constant 1 : i32
    %c0_i32_67 = arith.constant 0 : i32
    %188 = vector.broadcast %c1_i32_66 : i32 to vector<1x128xi32>
    %189 = vector.broadcast %c0_i32_67 : i32 to vector<1x128xi32>
    %190 = arith.select %187, %188, %189 : vector<1x128xi1>, vector<1x128xi32>
    %cst_68 = arith.constant dense<0> : vector<1xi32>
    %191 = vector.multi_reduction <add>, %190, %cst_68 [1] : vector<1x128xi32> to vector<1xi32>
    %192 = vector.shape_cast %191 : vector<1xi32> to vector<1x1xi32>
    %c32_i32_69 = arith.constant 32 : i32
    %193 = vector.broadcast %c32_i32_69 : i32 to vector<1x1xi32>
    %194 = arith.cmpi sge, %192, %193 : vector<1x1xi32>
    %c1_i32_70 = arith.constant 1 : i32
    %195 = vector.broadcast %c1_i32_70 : i32 to vector<1x1xi32>
    %196 = arith.addi %185, %195 : vector<1x1xi32>
    %197 = arith.select %194, %180, %196 : vector<1x1xi1>, vector<1x1xi32>
    %198 = arith.select %194, %185, %181 : vector<1x1xi1>, vector<1x1xi32>
    %199 = arith.subi %198, %197 : vector<1x1xi32>
    %c1_i32_71 = arith.constant 1 : i32
    %200 = vector.broadcast %c1_i32_71 : i32 to vector<1x1xi32>
    %201 = arith.shrsi %199, %200 : vector<1x1xi32>
    %202 = arith.addi %197, %201 : vector<1x1xi32>
    %203 = vector.broadcast %202 : vector<1x1xi32> to vector<1x128xi32>
    %204 = arith.cmpi sle, %13, %203 : vector<1x128xi32>
    %c1_i32_72 = arith.constant 1 : i32
    %c0_i32_73 = arith.constant 0 : i32
    %205 = vector.broadcast %c1_i32_72 : i32 to vector<1x128xi32>
    %206 = vector.broadcast %c0_i32_73 : i32 to vector<1x128xi32>
    %207 = arith.select %204, %205, %206 : vector<1x128xi1>, vector<1x128xi32>
    %cst_74 = arith.constant dense<0> : vector<1xi32>
    %208 = vector.multi_reduction <add>, %207, %cst_74 [1] : vector<1x128xi32> to vector<1xi32>
    %209 = vector.shape_cast %208 : vector<1xi32> to vector<1x1xi32>
    %c32_i32_75 = arith.constant 32 : i32
    %210 = vector.broadcast %c32_i32_75 : i32 to vector<1x1xi32>
    %211 = arith.cmpi sge, %209, %210 : vector<1x1xi32>
    %c1_i32_76 = arith.constant 1 : i32
    %212 = vector.broadcast %c1_i32_76 : i32 to vector<1x1xi32>
    %213 = arith.addi %202, %212 : vector<1x1xi32>
    %214 = arith.select %211, %197, %213 : vector<1x1xi1>, vector<1x1xi32>
    %215 = arith.select %211, %202, %198 : vector<1x1xi1>, vector<1x1xi32>
    %216 = arith.subi %215, %214 : vector<1x1xi32>
    %c1_i32_77 = arith.constant 1 : i32
    %217 = vector.broadcast %c1_i32_77 : i32 to vector<1x1xi32>
    %218 = arith.shrsi %216, %217 : vector<1x1xi32>
    %219 = arith.addi %214, %218 : vector<1x1xi32>
    %220 = vector.broadcast %219 : vector<1x1xi32> to vector<1x128xi32>
    %221 = arith.cmpi sle, %13, %220 : vector<1x128xi32>
    %c1_i32_78 = arith.constant 1 : i32
    %c0_i32_79 = arith.constant 0 : i32
    %222 = vector.broadcast %c1_i32_78 : i32 to vector<1x128xi32>
    %223 = vector.broadcast %c0_i32_79 : i32 to vector<1x128xi32>
    %224 = arith.select %221, %222, %223 : vector<1x128xi1>, vector<1x128xi32>
    %cst_80 = arith.constant dense<0> : vector<1xi32>
    %225 = vector.multi_reduction <add>, %224, %cst_80 [1] : vector<1x128xi32> to vector<1xi32>
    %226 = vector.shape_cast %225 : vector<1xi32> to vector<1x1xi32>
    %c32_i32_81 = arith.constant 32 : i32
    %227 = vector.broadcast %c32_i32_81 : i32 to vector<1x1xi32>
    %228 = arith.cmpi sge, %226, %227 : vector<1x1xi32>
    %c1_i32_82 = arith.constant 1 : i32
    %229 = vector.broadcast %c1_i32_82 : i32 to vector<1x1xi32>
    %230 = arith.addi %219, %229 : vector<1x1xi32>
    %231 = arith.select %228, %214, %230 : vector<1x1xi1>, vector<1x1xi32>
    %232 = arith.select %228, %219, %215 : vector<1x1xi1>, vector<1x1xi32>
    %233 = arith.subi %232, %231 : vector<1x1xi32>
    %c1_i32_83 = arith.constant 1 : i32
    %234 = vector.broadcast %c1_i32_83 : i32 to vector<1x1xi32>
    %235 = arith.shrsi %233, %234 : vector<1x1xi32>
    %236 = arith.addi %231, %235 : vector<1x1xi32>
    %237 = vector.broadcast %236 : vector<1x1xi32> to vector<1x128xi32>
    %238 = arith.cmpi sle, %13, %237 : vector<1x128xi32>
    %c1_i32_84 = arith.constant 1 : i32
    %c0_i32_85 = arith.constant 0 : i32
    %239 = vector.broadcast %c1_i32_84 : i32 to vector<1x128xi32>
    %240 = vector.broadcast %c0_i32_85 : i32 to vector<1x128xi32>
    %241 = arith.select %238, %239, %240 : vector<1x128xi1>, vector<1x128xi32>
    %cst_86 = arith.constant dense<0> : vector<1xi32>
    %242 = vector.multi_reduction <add>, %241, %cst_86 [1] : vector<1x128xi32> to vector<1xi32>
    %243 = vector.shape_cast %242 : vector<1xi32> to vector<1x1xi32>
    %c32_i32_87 = arith.constant 32 : i32
    %244 = vector.broadcast %c32_i32_87 : i32 to vector<1x1xi32>
    %245 = arith.cmpi sge, %243, %244 : vector<1x1xi32>
    %c1_i32_88 = arith.constant 1 : i32
    %246 = vector.broadcast %c1_i32_88 : i32 to vector<1x1xi32>
    %247 = arith.addi %236, %246 : vector<1x1xi32>
    %248 = arith.select %245, %231, %247 : vector<1x1xi1>, vector<1x1xi32>
    %249 = arith.select %245, %236, %232 : vector<1x1xi1>, vector<1x1xi32>
    %250 = arith.subi %249, %248 : vector<1x1xi32>
    %c1_i32_89 = arith.constant 1 : i32
    %251 = vector.broadcast %c1_i32_89 : i32 to vector<1x1xi32>
    %252 = arith.shrsi %250, %251 : vector<1x1xi32>
    %253 = arith.addi %248, %252 : vector<1x1xi32>
    %254 = vector.broadcast %253 : vector<1x1xi32> to vector<1x128xi32>
    %255 = arith.cmpi sle, %13, %254 : vector<1x128xi32>
    %c1_i32_90 = arith.constant 1 : i32
    %c0_i32_91 = arith.constant 0 : i32
    %256 = vector.broadcast %c1_i32_90 : i32 to vector<1x128xi32>
    %257 = vector.broadcast %c0_i32_91 : i32 to vector<1x128xi32>
    %258 = arith.select %255, %256, %257 : vector<1x128xi1>, vector<1x128xi32>
    %cst_92 = arith.constant dense<0> : vector<1xi32>
    %259 = vector.multi_reduction <add>, %258, %cst_92 [1] : vector<1x128xi32> to vector<1xi32>
    %260 = vector.shape_cast %259 : vector<1xi32> to vector<1x1xi32>
    %c32_i32_93 = arith.constant 32 : i32
    %261 = vector.broadcast %c32_i32_93 : i32 to vector<1x1xi32>
    %262 = arith.cmpi sge, %260, %261 : vector<1x1xi32>
    %c1_i32_94 = arith.constant 1 : i32
    %263 = vector.broadcast %c1_i32_94 : i32 to vector<1x1xi32>
    %264 = arith.addi %253, %263 : vector<1x1xi32>
    %265 = arith.select %262, %248, %264 : vector<1x1xi1>, vector<1x1xi32>
    %266 = arith.select %262, %253, %249 : vector<1x1xi1>, vector<1x1xi32>
    %267 = arith.subi %266, %265 : vector<1x1xi32>
    %c1_i32_95 = arith.constant 1 : i32
    %268 = vector.broadcast %c1_i32_95 : i32 to vector<1x1xi32>
    %269 = arith.shrsi %267, %268 : vector<1x1xi32>
    %270 = arith.addi %265, %269 : vector<1x1xi32>
    %271 = vector.broadcast %270 : vector<1x1xi32> to vector<1x128xi32>
    %272 = arith.cmpi sle, %13, %271 : vector<1x128xi32>
    %c1_i32_96 = arith.constant 1 : i32
    %c0_i32_97 = arith.constant 0 : i32
    %273 = vector.broadcast %c1_i32_96 : i32 to vector<1x128xi32>
    %274 = vector.broadcast %c0_i32_97 : i32 to vector<1x128xi32>
    %275 = arith.select %272, %273, %274 : vector<1x128xi1>, vector<1x128xi32>
    %cst_98 = arith.constant dense<0> : vector<1xi32>
    %276 = vector.multi_reduction <add>, %275, %cst_98 [1] : vector<1x128xi32> to vector<1xi32>
    %277 = vector.shape_cast %276 : vector<1xi32> to vector<1x1xi32>
    %c32_i32_99 = arith.constant 32 : i32
    %278 = vector.broadcast %c32_i32_99 : i32 to vector<1x1xi32>
    %279 = arith.cmpi sge, %277, %278 : vector<1x1xi32>
    %c1_i32_100 = arith.constant 1 : i32
    %280 = vector.broadcast %c1_i32_100 : i32 to vector<1x1xi32>
    %281 = arith.addi %270, %280 : vector<1x1xi32>
    %282 = arith.select %279, %265, %281 : vector<1x1xi1>, vector<1x1xi32>
    %283 = arith.select %279, %270, %266 : vector<1x1xi1>, vector<1x1xi32>
    %284 = arith.subi %283, %282 : vector<1x1xi32>
    %c1_i32_101 = arith.constant 1 : i32
    %285 = vector.broadcast %c1_i32_101 : i32 to vector<1x1xi32>
    %286 = arith.shrsi %284, %285 : vector<1x1xi32>
    %287 = arith.addi %282, %286 : vector<1x1xi32>
    %288 = vector.broadcast %287 : vector<1x1xi32> to vector<1x128xi32>
    %289 = arith.cmpi sle, %13, %288 : vector<1x128xi32>
    %c1_i32_102 = arith.constant 1 : i32
    %c0_i32_103 = arith.constant 0 : i32
    %290 = vector.broadcast %c1_i32_102 : i32 to vector<1x128xi32>
    %291 = vector.broadcast %c0_i32_103 : i32 to vector<1x128xi32>
    %292 = arith.select %289, %290, %291 : vector<1x128xi1>, vector<1x128xi32>
    %cst_104 = arith.constant dense<0> : vector<1xi32>
    %293 = vector.multi_reduction <add>, %292, %cst_104 [1] : vector<1x128xi32> to vector<1xi32>
    %294 = vector.shape_cast %293 : vector<1xi32> to vector<1x1xi32>
    %c32_i32_105 = arith.constant 32 : i32
    %295 = vector.broadcast %c32_i32_105 : i32 to vector<1x1xi32>
    %296 = arith.cmpi sge, %294, %295 : vector<1x1xi32>
    %c1_i32_106 = arith.constant 1 : i32
    %297 = vector.broadcast %c1_i32_106 : i32 to vector<1x1xi32>
    %298 = arith.addi %287, %297 : vector<1x1xi32>
    %299 = arith.select %296, %282, %298 : vector<1x1xi1>, vector<1x1xi32>
    %300 = arith.select %296, %287, %283 : vector<1x1xi1>, vector<1x1xi32>
    %301 = arith.subi %300, %299 : vector<1x1xi32>
    %c1_i32_107 = arith.constant 1 : i32
    %302 = vector.broadcast %c1_i32_107 : i32 to vector<1x1xi32>
    %303 = arith.shrsi %301, %302 : vector<1x1xi32>
    %304 = arith.addi %299, %303 : vector<1x1xi32>
    %305 = vector.broadcast %304 : vector<1x1xi32> to vector<1x128xi32>
    %306 = arith.cmpi sle, %13, %305 : vector<1x128xi32>
    %c1_i32_108 = arith.constant 1 : i32
    %c0_i32_109 = arith.constant 0 : i32
    %307 = vector.broadcast %c1_i32_108 : i32 to vector<1x128xi32>
    %308 = vector.broadcast %c0_i32_109 : i32 to vector<1x128xi32>
    %309 = arith.select %306, %307, %308 : vector<1x128xi1>, vector<1x128xi32>
    %cst_110 = arith.constant dense<0> : vector<1xi32>
    %310 = vector.multi_reduction <add>, %309, %cst_110 [1] : vector<1x128xi32> to vector<1xi32>
    %311 = vector.shape_cast %310 : vector<1xi32> to vector<1x1xi32>
    %c32_i32_111 = arith.constant 32 : i32
    %312 = vector.broadcast %c32_i32_111 : i32 to vector<1x1xi32>
    %313 = arith.cmpi sge, %311, %312 : vector<1x1xi32>
    %c1_i32_112 = arith.constant 1 : i32
    %314 = vector.broadcast %c1_i32_112 : i32 to vector<1x1xi32>
    %315 = arith.addi %304, %314 : vector<1x1xi32>
    %316 = arith.select %313, %299, %315 : vector<1x1xi1>, vector<1x1xi32>
    %317 = arith.select %313, %304, %300 : vector<1x1xi1>, vector<1x1xi32>
    %318 = arith.subi %317, %316 : vector<1x1xi32>
    %c1_i32_113 = arith.constant 1 : i32
    %319 = vector.broadcast %c1_i32_113 : i32 to vector<1x1xi32>
    %320 = arith.shrsi %318, %319 : vector<1x1xi32>
    %321 = arith.addi %316, %320 : vector<1x1xi32>
    %322 = vector.broadcast %321 : vector<1x1xi32> to vector<1x128xi32>
    %323 = arith.cmpi sle, %13, %322 : vector<1x128xi32>
    %c1_i32_114 = arith.constant 1 : i32
    %c0_i32_115 = arith.constant 0 : i32
    %324 = vector.broadcast %c1_i32_114 : i32 to vector<1x128xi32>
    %325 = vector.broadcast %c0_i32_115 : i32 to vector<1x128xi32>
    %326 = arith.select %323, %324, %325 : vector<1x128xi1>, vector<1x128xi32>
    %cst_116 = arith.constant dense<0> : vector<1xi32>
    %327 = vector.multi_reduction <add>, %326, %cst_116 [1] : vector<1x128xi32> to vector<1xi32>
    %328 = vector.shape_cast %327 : vector<1xi32> to vector<1x1xi32>
    %c32_i32_117 = arith.constant 32 : i32
    %329 = vector.broadcast %c32_i32_117 : i32 to vector<1x1xi32>
    %330 = arith.cmpi sge, %328, %329 : vector<1x1xi32>
    %c1_i32_118 = arith.constant 1 : i32
    %331 = vector.broadcast %c1_i32_118 : i32 to vector<1x1xi32>
    %332 = arith.addi %321, %331 : vector<1x1xi32>
    %333 = arith.select %330, %316, %332 : vector<1x1xi1>, vector<1x1xi32>
    %334 = arith.select %330, %321, %317 : vector<1x1xi1>, vector<1x1xi32>
    %335 = arith.subi %334, %333 : vector<1x1xi32>
    %c1_i32_119 = arith.constant 1 : i32
    %336 = vector.broadcast %c1_i32_119 : i32 to vector<1x1xi32>
    %337 = arith.shrsi %335, %336 : vector<1x1xi32>
    %338 = arith.addi %333, %337 : vector<1x1xi32>
    %339 = vector.broadcast %338 : vector<1x1xi32> to vector<1x128xi32>
    %340 = arith.cmpi sle, %13, %339 : vector<1x128xi32>
    %c1_i32_120 = arith.constant 1 : i32
    %c0_i32_121 = arith.constant 0 : i32
    %341 = vector.broadcast %c1_i32_120 : i32 to vector<1x128xi32>
    %342 = vector.broadcast %c0_i32_121 : i32 to vector<1x128xi32>
    %343 = arith.select %340, %341, %342 : vector<1x128xi1>, vector<1x128xi32>
    %cst_122 = arith.constant dense<0> : vector<1xi32>
    %344 = vector.multi_reduction <add>, %343, %cst_122 [1] : vector<1x128xi32> to vector<1xi32>
    %345 = vector.shape_cast %344 : vector<1xi32> to vector<1x1xi32>
    %c32_i32_123 = arith.constant 32 : i32
    %346 = vector.broadcast %c32_i32_123 : i32 to vector<1x1xi32>
    %347 = arith.cmpi sge, %345, %346 : vector<1x1xi32>
    %c1_i32_124 = arith.constant 1 : i32
    %348 = vector.broadcast %c1_i32_124 : i32 to vector<1x1xi32>
    %349 = arith.addi %338, %348 : vector<1x1xi32>
    %350 = arith.select %347, %333, %349 : vector<1x1xi1>, vector<1x1xi32>
    %351 = arith.select %347, %338, %334 : vector<1x1xi1>, vector<1x1xi32>
    %352 = arith.subi %351, %350 : vector<1x1xi32>
    %c1_i32_125 = arith.constant 1 : i32
    %353 = vector.broadcast %c1_i32_125 : i32 to vector<1x1xi32>
    %354 = arith.shrsi %352, %353 : vector<1x1xi32>
    %355 = arith.addi %350, %354 : vector<1x1xi32>
    %356 = vector.broadcast %355 : vector<1x1xi32> to vector<1x128xi32>
    %357 = arith.cmpi sle, %13, %356 : vector<1x128xi32>
    %c1_i32_126 = arith.constant 1 : i32
    %c0_i32_127 = arith.constant 0 : i32
    %358 = vector.broadcast %c1_i32_126 : i32 to vector<1x128xi32>
    %359 = vector.broadcast %c0_i32_127 : i32 to vector<1x128xi32>
    %360 = arith.select %357, %358, %359 : vector<1x128xi1>, vector<1x128xi32>
    %cst_128 = arith.constant dense<0> : vector<1xi32>
    %361 = vector.multi_reduction <add>, %360, %cst_128 [1] : vector<1x128xi32> to vector<1xi32>
    %362 = vector.shape_cast %361 : vector<1xi32> to vector<1x1xi32>
    %c32_i32_129 = arith.constant 32 : i32
    %363 = vector.broadcast %c32_i32_129 : i32 to vector<1x1xi32>
    %364 = arith.cmpi sge, %362, %363 : vector<1x1xi32>
    %c1_i32_130 = arith.constant 1 : i32
    %365 = vector.broadcast %c1_i32_130 : i32 to vector<1x1xi32>
    %366 = arith.addi %355, %365 : vector<1x1xi32>
    %367 = arith.select %364, %350, %366 : vector<1x1xi1>, vector<1x1xi32>
    %368 = arith.select %364, %355, %351 : vector<1x1xi1>, vector<1x1xi32>
    %369 = arith.subi %368, %367 : vector<1x1xi32>
    %c1_i32_131 = arith.constant 1 : i32
    %370 = vector.broadcast %c1_i32_131 : i32 to vector<1x1xi32>
    %371 = arith.shrsi %369, %370 : vector<1x1xi32>
    %372 = arith.addi %367, %371 : vector<1x1xi32>
    %373 = vector.broadcast %372 : vector<1x1xi32> to vector<1x128xi32>
    %374 = arith.cmpi sle, %13, %373 : vector<1x128xi32>
    %c1_i32_132 = arith.constant 1 : i32
    %c0_i32_133 = arith.constant 0 : i32
    %375 = vector.broadcast %c1_i32_132 : i32 to vector<1x128xi32>
    %376 = vector.broadcast %c0_i32_133 : i32 to vector<1x128xi32>
    %377 = arith.select %374, %375, %376 : vector<1x128xi1>, vector<1x128xi32>
    %cst_134 = arith.constant dense<0> : vector<1xi32>
    %378 = vector.multi_reduction <add>, %377, %cst_134 [1] : vector<1x128xi32> to vector<1xi32>
    %379 = vector.shape_cast %378 : vector<1xi32> to vector<1x1xi32>
    %c32_i32_135 = arith.constant 32 : i32
    %380 = vector.broadcast %c32_i32_135 : i32 to vector<1x1xi32>
    %381 = arith.cmpi sge, %379, %380 : vector<1x1xi32>
    %c1_i32_136 = arith.constant 1 : i32
    %382 = vector.broadcast %c1_i32_136 : i32 to vector<1x1xi32>
    %383 = arith.addi %372, %382 : vector<1x1xi32>
    %384 = arith.select %381, %367, %383 : vector<1x1xi1>, vector<1x1xi32>
    %385 = arith.select %381, %372, %368 : vector<1x1xi1>, vector<1x1xi32>
    %386 = arith.subi %385, %384 : vector<1x1xi32>
    %c1_i32_137 = arith.constant 1 : i32
    %387 = vector.broadcast %c1_i32_137 : i32 to vector<1x1xi32>
    %388 = arith.shrsi %386, %387 : vector<1x1xi32>
    %389 = arith.addi %384, %388 : vector<1x1xi32>
    %390 = vector.broadcast %389 : vector<1x1xi32> to vector<1x128xi32>
    %391 = arith.cmpi sle, %13, %390 : vector<1x128xi32>
    %c1_i32_138 = arith.constant 1 : i32
    %c0_i32_139 = arith.constant 0 : i32
    %392 = vector.broadcast %c1_i32_138 : i32 to vector<1x128xi32>
    %393 = vector.broadcast %c0_i32_139 : i32 to vector<1x128xi32>
    %394 = arith.select %391, %392, %393 : vector<1x128xi1>, vector<1x128xi32>
    %cst_140 = arith.constant dense<0> : vector<1xi32>
    %395 = vector.multi_reduction <add>, %394, %cst_140 [1] : vector<1x128xi32> to vector<1xi32>
    %396 = vector.shape_cast %395 : vector<1xi32> to vector<1x1xi32>
    %c32_i32_141 = arith.constant 32 : i32
    %397 = vector.broadcast %c32_i32_141 : i32 to vector<1x1xi32>
    %398 = arith.cmpi sge, %396, %397 : vector<1x1xi32>
    %c1_i32_142 = arith.constant 1 : i32
    %399 = vector.broadcast %c1_i32_142 : i32 to vector<1x1xi32>
    %400 = arith.addi %389, %399 : vector<1x1xi32>
    %401 = arith.select %398, %384, %400 : vector<1x1xi1>, vector<1x1xi32>
    %402 = arith.select %398, %389, %385 : vector<1x1xi1>, vector<1x1xi32>
    %403 = arith.subi %402, %401 : vector<1x1xi32>
    %c1_i32_143 = arith.constant 1 : i32
    %404 = vector.broadcast %c1_i32_143 : i32 to vector<1x1xi32>
    %405 = arith.shrsi %403, %404 : vector<1x1xi32>
    %406 = arith.addi %401, %405 : vector<1x1xi32>
    %407 = vector.broadcast %406 : vector<1x1xi32> to vector<1x128xi32>
    %408 = arith.cmpi sle, %13, %407 : vector<1x128xi32>
    %c1_i32_144 = arith.constant 1 : i32
    %c0_i32_145 = arith.constant 0 : i32
    %409 = vector.broadcast %c1_i32_144 : i32 to vector<1x128xi32>
    %410 = vector.broadcast %c0_i32_145 : i32 to vector<1x128xi32>
    %411 = arith.select %408, %409, %410 : vector<1x128xi1>, vector<1x128xi32>
    %cst_146 = arith.constant dense<0> : vector<1xi32>
    %412 = vector.multi_reduction <add>, %411, %cst_146 [1] : vector<1x128xi32> to vector<1xi32>
    %413 = vector.shape_cast %412 : vector<1xi32> to vector<1x1xi32>
    %c32_i32_147 = arith.constant 32 : i32
    %414 = vector.broadcast %c32_i32_147 : i32 to vector<1x1xi32>
    %415 = arith.cmpi sge, %413, %414 : vector<1x1xi32>
    %c1_i32_148 = arith.constant 1 : i32
    %416 = vector.broadcast %c1_i32_148 : i32 to vector<1x1xi32>
    %417 = arith.addi %406, %416 : vector<1x1xi32>
    %418 = arith.select %415, %401, %417 : vector<1x1xi1>, vector<1x1xi32>
    %419 = arith.select %415, %406, %402 : vector<1x1xi1>, vector<1x1xi32>
    %420 = arith.subi %419, %418 : vector<1x1xi32>
    %c1_i32_149 = arith.constant 1 : i32
    %421 = vector.broadcast %c1_i32_149 : i32 to vector<1x1xi32>
    %422 = arith.shrsi %420, %421 : vector<1x1xi32>
    %423 = arith.addi %418, %422 : vector<1x1xi32>
    %424 = vector.broadcast %423 : vector<1x1xi32> to vector<1x128xi32>
    %425 = arith.cmpi sle, %13, %424 : vector<1x128xi32>
    %c1_i32_150 = arith.constant 1 : i32
    %c0_i32_151 = arith.constant 0 : i32
    %426 = vector.broadcast %c1_i32_150 : i32 to vector<1x128xi32>
    %427 = vector.broadcast %c0_i32_151 : i32 to vector<1x128xi32>
    %428 = arith.select %425, %426, %427 : vector<1x128xi1>, vector<1x128xi32>
    %cst_152 = arith.constant dense<0> : vector<1xi32>
    %429 = vector.multi_reduction <add>, %428, %cst_152 [1] : vector<1x128xi32> to vector<1xi32>
    %430 = vector.shape_cast %429 : vector<1xi32> to vector<1x1xi32>
    %c32_i32_153 = arith.constant 32 : i32
    %431 = vector.broadcast %c32_i32_153 : i32 to vector<1x1xi32>
    %432 = arith.cmpi sge, %430, %431 : vector<1x1xi32>
    %c1_i32_154 = arith.constant 1 : i32
    %433 = vector.broadcast %c1_i32_154 : i32 to vector<1x1xi32>
    %434 = arith.addi %423, %433 : vector<1x1xi32>
    %435 = arith.select %432, %418, %434 : vector<1x1xi1>, vector<1x1xi32>
    %436 = arith.select %432, %423, %419 : vector<1x1xi1>, vector<1x1xi32>
    %437 = arith.subi %436, %435 : vector<1x1xi32>
    %c1_i32_155 = arith.constant 1 : i32
    %438 = vector.broadcast %c1_i32_155 : i32 to vector<1x1xi32>
    %439 = arith.shrsi %437, %438 : vector<1x1xi32>
    %440 = arith.addi %435, %439 : vector<1x1xi32>
    %441 = vector.broadcast %440 : vector<1x1xi32> to vector<1x128xi32>
    %442 = arith.cmpi sle, %13, %441 : vector<1x128xi32>
    %c1_i32_156 = arith.constant 1 : i32
    %c0_i32_157 = arith.constant 0 : i32
    %443 = vector.broadcast %c1_i32_156 : i32 to vector<1x128xi32>
    %444 = vector.broadcast %c0_i32_157 : i32 to vector<1x128xi32>
    %445 = arith.select %442, %443, %444 : vector<1x128xi1>, vector<1x128xi32>
    %cst_158 = arith.constant dense<0> : vector<1xi32>
    %446 = vector.multi_reduction <add>, %445, %cst_158 [1] : vector<1x128xi32> to vector<1xi32>
    %447 = vector.shape_cast %446 : vector<1xi32> to vector<1x1xi32>
    %c32_i32_159 = arith.constant 32 : i32
    %448 = vector.broadcast %c32_i32_159 : i32 to vector<1x1xi32>
    %449 = arith.cmpi sge, %447, %448 : vector<1x1xi32>
    %c1_i32_160 = arith.constant 1 : i32
    %450 = vector.broadcast %c1_i32_160 : i32 to vector<1x1xi32>
    %451 = arith.addi %440, %450 : vector<1x1xi32>
    %452 = arith.select %449, %435, %451 : vector<1x1xi1>, vector<1x1xi32>
    %453 = arith.select %449, %440, %436 : vector<1x1xi1>, vector<1x1xi32>
    %454 = arith.subi %453, %452 : vector<1x1xi32>
    %c1_i32_161 = arith.constant 1 : i32
    %455 = vector.broadcast %c1_i32_161 : i32 to vector<1x1xi32>
    %456 = arith.shrsi %454, %455 : vector<1x1xi32>
    %457 = arith.addi %452, %456 : vector<1x1xi32>
    %458 = vector.broadcast %457 : vector<1x1xi32> to vector<1x128xi32>
    %459 = arith.cmpi sle, %13, %458 : vector<1x128xi32>
    %c1_i32_162 = arith.constant 1 : i32
    %c0_i32_163 = arith.constant 0 : i32
    %460 = vector.broadcast %c1_i32_162 : i32 to vector<1x128xi32>
    %461 = vector.broadcast %c0_i32_163 : i32 to vector<1x128xi32>
    %462 = arith.select %459, %460, %461 : vector<1x128xi1>, vector<1x128xi32>
    %cst_164 = arith.constant dense<0> : vector<1xi32>
    %463 = vector.multi_reduction <add>, %462, %cst_164 [1] : vector<1x128xi32> to vector<1xi32>
    %464 = vector.shape_cast %463 : vector<1xi32> to vector<1x1xi32>
    %c32_i32_165 = arith.constant 32 : i32
    %465 = vector.broadcast %c32_i32_165 : i32 to vector<1x1xi32>
    %466 = arith.cmpi sge, %464, %465 : vector<1x1xi32>
    %c1_i32_166 = arith.constant 1 : i32
    %467 = vector.broadcast %c1_i32_166 : i32 to vector<1x1xi32>
    %468 = arith.addi %457, %467 : vector<1x1xi32>
    %469 = arith.select %466, %452, %468 : vector<1x1xi1>, vector<1x1xi32>
    %470 = arith.select %466, %457, %453 : vector<1x1xi1>, vector<1x1xi32>
    %471 = arith.subi %470, %469 : vector<1x1xi32>
    %c1_i32_167 = arith.constant 1 : i32
    %472 = vector.broadcast %c1_i32_167 : i32 to vector<1x1xi32>
    %473 = arith.shrsi %471, %472 : vector<1x1xi32>
    %474 = arith.addi %469, %473 : vector<1x1xi32>
    %475 = vector.broadcast %474 : vector<1x1xi32> to vector<1x128xi32>
    %476 = arith.cmpi sle, %13, %475 : vector<1x128xi32>
    %c1_i32_168 = arith.constant 1 : i32
    %c0_i32_169 = arith.constant 0 : i32
    %477 = vector.broadcast %c1_i32_168 : i32 to vector<1x128xi32>
    %478 = vector.broadcast %c0_i32_169 : i32 to vector<1x128xi32>
    %479 = arith.select %476, %477, %478 : vector<1x128xi1>, vector<1x128xi32>
    %cst_170 = arith.constant dense<0> : vector<1xi32>
    %480 = vector.multi_reduction <add>, %479, %cst_170 [1] : vector<1x128xi32> to vector<1xi32>
    %481 = vector.shape_cast %480 : vector<1xi32> to vector<1x1xi32>
    %c32_i32_171 = arith.constant 32 : i32
    %482 = vector.broadcast %c32_i32_171 : i32 to vector<1x1xi32>
    %483 = arith.cmpi sge, %481, %482 : vector<1x1xi32>
    %c1_i32_172 = arith.constant 1 : i32
    %484 = vector.broadcast %c1_i32_172 : i32 to vector<1x1xi32>
    %485 = arith.addi %474, %484 : vector<1x1xi32>
    %486 = arith.select %483, %469, %485 : vector<1x1xi1>, vector<1x1xi32>
    %487 = arith.select %483, %474, %470 : vector<1x1xi1>, vector<1x1xi32>
    %488 = arith.subi %487, %486 : vector<1x1xi32>
    %c1_i32_173 = arith.constant 1 : i32
    %489 = vector.broadcast %c1_i32_173 : i32 to vector<1x1xi32>
    %490 = arith.shrsi %488, %489 : vector<1x1xi32>
    %491 = arith.addi %486, %490 : vector<1x1xi32>
    %492 = vector.broadcast %491 : vector<1x1xi32> to vector<1x128xi32>
    %493 = arith.cmpi sle, %13, %492 : vector<1x128xi32>
    %c1_i32_174 = arith.constant 1 : i32
    %c0_i32_175 = arith.constant 0 : i32
    %494 = vector.broadcast %c1_i32_174 : i32 to vector<1x128xi32>
    %495 = vector.broadcast %c0_i32_175 : i32 to vector<1x128xi32>
    %496 = arith.select %493, %494, %495 : vector<1x128xi1>, vector<1x128xi32>
    %cst_176 = arith.constant dense<0> : vector<1xi32>
    %497 = vector.multi_reduction <add>, %496, %cst_176 [1] : vector<1x128xi32> to vector<1xi32>
    %498 = vector.shape_cast %497 : vector<1xi32> to vector<1x1xi32>
    %c32_i32_177 = arith.constant 32 : i32
    %499 = vector.broadcast %c32_i32_177 : i32 to vector<1x1xi32>
    %500 = arith.cmpi sge, %498, %499 : vector<1x1xi32>
    %c1_i32_178 = arith.constant 1 : i32
    %501 = vector.broadcast %c1_i32_178 : i32 to vector<1x1xi32>
    %502 = arith.addi %491, %501 : vector<1x1xi32>
    %503 = arith.select %500, %486, %502 : vector<1x1xi1>, vector<1x1xi32>
    %504 = arith.select %500, %491, %487 : vector<1x1xi1>, vector<1x1xi32>
    %505 = arith.subi %504, %503 : vector<1x1xi32>
    %c1_i32_179 = arith.constant 1 : i32
    %506 = vector.broadcast %c1_i32_179 : i32 to vector<1x1xi32>
    %507 = arith.shrsi %505, %506 : vector<1x1xi32>
    %508 = arith.addi %503, %507 : vector<1x1xi32>
    %509 = vector.broadcast %508 : vector<1x1xi32> to vector<1x128xi32>
    %510 = arith.cmpi sle, %13, %509 : vector<1x128xi32>
    %c1_i32_180 = arith.constant 1 : i32
    %c0_i32_181 = arith.constant 0 : i32
    %511 = vector.broadcast %c1_i32_180 : i32 to vector<1x128xi32>
    %512 = vector.broadcast %c0_i32_181 : i32 to vector<1x128xi32>
    %513 = arith.select %510, %511, %512 : vector<1x128xi1>, vector<1x128xi32>
    %cst_182 = arith.constant dense<0> : vector<1xi32>
    %514 = vector.multi_reduction <add>, %513, %cst_182 [1] : vector<1x128xi32> to vector<1xi32>
    %515 = vector.shape_cast %514 : vector<1xi32> to vector<1x1xi32>
    %c32_i32_183 = arith.constant 32 : i32
    %516 = vector.broadcast %c32_i32_183 : i32 to vector<1x1xi32>
    %517 = arith.cmpi sge, %515, %516 : vector<1x1xi32>
    %c1_i32_184 = arith.constant 1 : i32
    %518 = vector.broadcast %c1_i32_184 : i32 to vector<1x1xi32>
    %519 = arith.addi %508, %518 : vector<1x1xi32>
    %520 = arith.select %517, %503, %519 : vector<1x1xi1>, vector<1x1xi32>
    %521 = arith.select %517, %508, %504 : vector<1x1xi1>, vector<1x1xi32>
    %522 = arith.subi %521, %520 : vector<1x1xi32>
    %c1_i32_185 = arith.constant 1 : i32
    %523 = vector.broadcast %c1_i32_185 : i32 to vector<1x1xi32>
    %524 = arith.shrsi %522, %523 : vector<1x1xi32>
    %525 = arith.addi %520, %524 : vector<1x1xi32>
    %526 = vector.broadcast %525 : vector<1x1xi32> to vector<1x128xi32>
    %527 = arith.cmpi sle, %13, %526 : vector<1x128xi32>
    %c1_i32_186 = arith.constant 1 : i32
    %c0_i32_187 = arith.constant 0 : i32
    %528 = vector.broadcast %c1_i32_186 : i32 to vector<1x128xi32>
    %529 = vector.broadcast %c0_i32_187 : i32 to vector<1x128xi32>
    %530 = arith.select %527, %528, %529 : vector<1x128xi1>, vector<1x128xi32>
    %cst_188 = arith.constant dense<0> : vector<1xi32>
    %531 = vector.multi_reduction <add>, %530, %cst_188 [1] : vector<1x128xi32> to vector<1xi32>
    %532 = vector.shape_cast %531 : vector<1xi32> to vector<1x1xi32>
    %c32_i32_189 = arith.constant 32 : i32
    %533 = vector.broadcast %c32_i32_189 : i32 to vector<1x1xi32>
    %534 = arith.cmpi sge, %532, %533 : vector<1x1xi32>
    %c1_i32_190 = arith.constant 1 : i32
    %535 = vector.broadcast %c1_i32_190 : i32 to vector<1x1xi32>
    %536 = arith.addi %525, %535 : vector<1x1xi32>
    %537 = arith.select %534, %520, %536 : vector<1x1xi1>, vector<1x1xi32>
    %538 = arith.select %534, %525, %521 : vector<1x1xi1>, vector<1x1xi32>
    %539 = arith.subi %538, %537 : vector<1x1xi32>
    %c1_i32_191 = arith.constant 1 : i32
    %540 = vector.broadcast %c1_i32_191 : i32 to vector<1x1xi32>
    %541 = arith.shrsi %539, %540 : vector<1x1xi32>
    %542 = arith.addi %537, %541 : vector<1x1xi32>
    %543 = vector.broadcast %542 : vector<1x1xi32> to vector<1x128xi32>
    %544 = arith.cmpi sle, %13, %543 : vector<1x128xi32>
    %c1_i32_192 = arith.constant 1 : i32
    %c0_i32_193 = arith.constant 0 : i32
    %545 = vector.broadcast %c1_i32_192 : i32 to vector<1x128xi32>
    %546 = vector.broadcast %c0_i32_193 : i32 to vector<1x128xi32>
    %547 = arith.select %544, %545, %546 : vector<1x128xi1>, vector<1x128xi32>
    %cst_194 = arith.constant dense<0> : vector<1xi32>
    %548 = vector.multi_reduction <add>, %547, %cst_194 [1] : vector<1x128xi32> to vector<1xi32>
    %549 = vector.shape_cast %548 : vector<1xi32> to vector<1x1xi32>
    %c32_i32_195 = arith.constant 32 : i32
    %550 = vector.broadcast %c32_i32_195 : i32 to vector<1x1xi32>
    %551 = arith.cmpi sge, %549, %550 : vector<1x1xi32>
    %552 = arith.select %551, %542, %538 : vector<1x1xi1>, vector<1x1xi32>
    %553 = vector.broadcast %552 : vector<1x1xi32> to vector<1x128xi32>
    %554 = arith.cmpi sle, %13, %553 : vector<1x128xi32>
    %555 = arith.andi %554, %5 : vector<1x128xi1>
    %556 = arith.extui %555 : vector<1x128xi1> to vector<1x128xi32>
    %c0_i32_196 = arith.constant 0 : i32
    %557 = vector.broadcast %c0_i32_196 : i32 to vector<1x1xi32>
    %558 = vector.extract_strided_slice %556 {offsets = [0, 0], sizes = [1, 127], strides = [1, 1]} : vector<1x128xi32> to vector<1x127xi32>
    %559 = tpu.concatenate %557, %558 in 1 : vector<1x1xi32>, vector<1x127xi32> -> vector<1x128xi32>
    %560 = arith.addi %556, %559 : vector<1x128xi32>
    %c0_i32_197 = arith.constant 0 : i32
    %561 = vector.broadcast %c0_i32_197 : i32 to vector<1x2xi32>
    %562 = vector.extract_strided_slice %560 {offsets = [0, 0], sizes = [1, 126], strides = [1, 1]} : vector<1x128xi32> to vector<1x126xi32>
    %563 = tpu.concatenate %561, %562 in 1 : vector<1x2xi32>, vector<1x126xi32> -> vector<1x128xi32>
    %564 = arith.addi %560, %563 : vector<1x128xi32>
    %c0_i32_198 = arith.constant 0 : i32
    %565 = vector.broadcast %c0_i32_198 : i32 to vector<1x4xi32>
    %566 = vector.extract_strided_slice %564 {offsets = [0, 0], sizes = [1, 124], strides = [1, 1]} : vector<1x128xi32> to vector<1x124xi32>
    %567 = tpu.concatenate %565, %566 in 1 : vector<1x4xi32>, vector<1x124xi32> -> vector<1x128xi32>
    %568 = arith.addi %564, %567 : vector<1x128xi32>
    %c0_i32_199 = arith.constant 0 : i32
    %569 = vector.broadcast %c0_i32_199 : i32 to vector<1x8xi32>
    %570 = vector.extract_strided_slice %568 {offsets = [0, 0], sizes = [1, 120], strides = [1, 1]} : vector<1x128xi32> to vector<1x120xi32>
    %571 = tpu.concatenate %569, %570 in 1 : vector<1x8xi32>, vector<1x120xi32> -> vector<1x128xi32>
    %572 = arith.addi %568, %571 : vector<1x128xi32>
    %c0_i32_200 = arith.constant 0 : i32
    %573 = vector.broadcast %c0_i32_200 : i32 to vector<1x16xi32>
    %574 = vector.extract_strided_slice %572 {offsets = [0, 0], sizes = [1, 112], strides = [1, 1]} : vector<1x128xi32> to vector<1x112xi32>
    %575 = tpu.concatenate %573, %574 in 1 : vector<1x16xi32>, vector<1x112xi32> -> vector<1x128xi32>
    %576 = arith.addi %572, %575 : vector<1x128xi32>
    %c0_i32_201 = arith.constant 0 : i32
    %577 = vector.broadcast %c0_i32_201 : i32 to vector<1x32xi32>
    %578 = vector.extract_strided_slice %576 {offsets = [0, 0], sizes = [1, 96], strides = [1, 1]} : vector<1x128xi32> to vector<1x96xi32>
    %579 = tpu.concatenate %577, %578 in 1 : vector<1x32xi32>, vector<1x96xi32> -> vector<1x128xi32>
    %580 = arith.addi %576, %579 : vector<1x128xi32>
    %c0_i32_202 = arith.constant 0 : i32
    %581 = vector.broadcast %c0_i32_202 : i32 to vector<1x64xi32>
    %582 = vector.extract_strided_slice %580 {offsets = [0, 0], sizes = [1, 64], strides = [1, 1]} : vector<1x128xi32> to vector<1x64xi32>
    %583 = tpu.concatenate %581, %582 in 1 : vector<1x64xi32>, vector<1x64xi32> -> vector<1x128xi32>
    %584 = arith.addi %580, %583 : vector<1x128xi32>
    %c1_i32_203 = arith.constant 1 : i32
    %585 = vector.broadcast %c1_i32_203 : i32 to vector<1x128xi32>
    %586 = arith.subi %584, %585 : vector<1x128xi32>
    %c-1_i32 = arith.constant -1 : i32
    %587 = vector.broadcast %c-1_i32 : i32 to vector<1x128xi32>
    %588 = arith.select %555, %586, %587 : vector<1x128xi1>, vector<1x128xi32>
    %c0_204 = arith.constant 0 : index
    %c0_205 = arith.constant 0 : index
    %c0_206 = arith.constant 0 : index
    %589 = vector.load %arg4[%c0_204, %c0_205, %c0_206] : memref<1x128x1xi32, #tpu.memory_space<vmem>>, vector<1x128x1xi32>
    %590 = vector.shape_cast %589 : vector<1x128x1xi32> to vector<128x1xi32>
    %591 = vector.broadcast %590 : vector<128x1xi32> to vector<128x128xi32>
    %592 = vector.broadcast %588 : vector<1x128xi32> to vector<128x128xi32>
    %593 = arith.cmpi eq, %591, %592 : vector<128x128xi32>
    %594 = arith.extui %593 : vector<128x128xi1> to vector<128x128xi32>
    %595 = arith.sitofp %594 : vector<128x128xi32> to vector<128x128xf32>
    %cst_207 = arith.constant dense<0.000000e+00> : vector<3x128xf32>
    %596 = tpu.matmul %1, %595, %cst_207 {dimension_numbers = #tpu.dot_dimension_numbers<[1], [1], [0], [0], [0, 0, 1, 0], [], []>} : vector<3x128xf32>, vector<128x128xf32>, vector<3x128xf32> -> vector<3x128xf32>
    %c0_208 = arith.constant 0 : index
    %c0_209 = arith.constant 0 : index
    %c0_210 = arith.constant 0 : index
    %597 = vector.load %arg5[%c0_208, %c0_209, %c0_210] : memref<1x3x128xf32, #tpu.memory_space<vmem>>, vector<1x3x128xf32>
    %598 = vector.shape_cast %597 : vector<1x3x128xf32> to vector<3x128xf32>
    %599 = vector.shape_cast %596 : vector<3x128xf32> to vector<1x3x128xf32>
    tpu.vector_store %arg5[%c0_208, %c0_209, %c0_210], %599 {strides = array<i32>} : memref<1x3x128xf32, #tpu.memory_space<vmem>>, vector<1x3x128xf32>,
    return
  }
  func.func @transform_0(%arg0: i32) -> (i32, i32, i32) {
    %c0_i32 = arith.constant 0 : i32
    %c0_i32_0 = arith.constant 0 : i32
    %c0_i32_1 = arith.constant 0 : i32
    return %arg0, %c0_i32, %c0_i32_0 : i32, i32, i32
  }
  func.func @transform_1(%arg0: i32) -> (i32, i32, i32) {
    %c0_i32 = arith.constant 0 : i32
    %c0_i32_0 = arith.constant 0 : i32
    %c0_i32_1 = arith.constant 0 : i32
    return %arg0, %c0_i32, %c0_i32_0 : i32, i32, i32
  }
  func.func @transform_2(%arg0: i32) -> (i32, i32, i32) {
    %c0_i32 = arith.constant 0 : i32
    %c0_i32_0 = arith.constant 0 : i32
    %c0_i32_1 = arith.constant 0 : i32
    return %arg0, %c0_i32, %c0_i32_0 : i32, i32, i32
  }
  func.func @transform_3(%arg0: i32) -> (i32, i32, i32) {
    %c0_i32 = arith.constant 0 : i32
    %c0_i32_0 = arith.constant 0 : i32
    %c0_i32_1 = arith.constant 0 : i32
    return %arg0, %c0_i32, %c0_i32_0 : i32, i32, i32
  }
  func.func @transform_4(%arg0: i32) -> (i32, i32, i32) {
    %c0_i32 = arith.constant 0 : i32
    %c0_i32_0 = arith.constant 0 : i32
    %c0_i32_1 = arith.constant 0 : i32
    return %arg0, %c0_i32, %c0_i32_0 : i32, i32, i32
  }
}

</mosaic_0001>

<bundles_post_ra>
// kernel: tpu_custom_call.1
= control target key start
LH: loop header
LB: loop body
LE: loop exit
PB: predicated region body
PF: predicated region fallthrough
CT: control target
= control target key end

     0   :  { %s1453_s15 = smov 0   ;;  %s1683_s0 = inlined_call_operand.vmem [shape: f32[2,3,128], index: 0, kind: input, shape index: {}]   ;;  %s1684_s1 = inlined_call_operand.vmem [shape: s32[2,1,128], index: 1, kind: input, shape index: {}]   ;;  %s1685_s2 = inlined_call_operand.vmem [shape: s32[2,1,128], index: 2, kind: input, shape index: {}]   ;;  %s1686_s3 = inlined_call_operand.vmem [shape: s32[2,128,1], index: 3, kind: input, shape index: {}]   ;;  %s1687_s4 = inlined_call_operand.vmem [shape: f32[2,3,128], index: 4, kind: output, shape index: {}]  }
   0x1 LB: > { %s1287_s16 = sadd.s32 4294967295, %s1413_s15   ;;  %p1291_p0 = scmp.ge.s32.totalorder %s1413_s15, 1  ;;  %s1413_s15 = sphi %s1453_s15, %s14_s15  }
   0x2   : > { %p187_p1 = scmp.lt.s32.totalorder %s1413_s15, 3 }
   0x4   : > { %p188_p2 = pnand %p1291_p0, %p187_p1 }
   0x5   : > { %p222_p3 = scmp.lt.s32.totalorder (!%p188_p2), %s1287_s16, 1  ;;  %s1418_s23 = smov (!%p188_p2), 1  }
   0x6   : > { %191 = sbr.rel (%p188_p2) target bundleno = 6214 (0x1846), region = 36  ;;  %s1419_s24 = smov (!%p188_p2), 2  }
   0x7   : > { %s1420_s25 = smov (!%p188_p2), 4   ;;  %s1421_s26 = smov (!%p188_p2), 8  }
   0x8   : > { %s1422_s27 = smov (!%p188_p2), 16   ;;  %s1423_s6 = smov (!%p188_p2), 32  }
   0x9   : > { %s1425_s7 = smov (!%p188_p2), 64  }
   0xb   : > { %v244_v0 = vlaneseq  ;;  %v1415_v1 = vmov 0   ;;  %s1691_s16 = smov (!%p222_p3, %s1287_s16), 1  ;;  %vm252_vm1 = vcmask 1040384   ;;  %v1416_v20 = vmov 1073741824  }
   0xc   : > { %1405 = vset.pattern.permute.xlu1 %v1415_v1  ;;  %1406 = vset.pattern.permute.xlu0 %v1415_v1  ;;  %s228_s19 = scalar_lea.vmem %s1684_s1, %s1691_s16  ;;  %s231_s22 = scalar_lea.vmem %s1685_s2, %s1691_s16  ;;  %v1417_v22 = vmov 2147483646  }
   0xd   : > { %v245_v2 = vand.u32 127, %v244_v0  ;;  %v1474_v3 = vld [vmem:[%s228_s19] sm:$0x1]  ;;  %s1331_s28 = sshll.u32 %s1691_s16, 7  ;;  %s1292_s8 = sshll.u32 %s1691_s16, 2 }
   0xe   : > { %v246_v4 = vld [vmem:[%s231_s22] sm:$0x1]  ;;  %vm243_vm0 = vcmp.ne.s32.totalorder %v1474_v3, 0  ;;  %s1600_s5 = scalar_lea.vmem %s1686_s3, %s1331_s28  ;;  %s225_s11 = scalar_lea.vmem %s1683_s0, %s1292_s8 }
   0xf   : > { %v247_v5 = vshll.u32 %v246_v4, 7  ;;  %s240_s14 = scalar_lea.vmem %s1687_s4, %s1292_s8 }
  0x11   : > { %v248_v6 = vor.u32 %v247_v5, %v245_v2 }
  0x13   : > { %v1479_v7 = vsel %vm243_vm0, %v248_v6, 2147483647 }
  0x14   : > { %vm250_vm2 = vcmp.le.s32.totalorder %v1479_v7, 1073741823 }
  0x15   : > { %v251_v8 = vsel %vm250_vm2, 1, %v1415_v1 }
  0x16   : > { %v253_v9 = vsel %vm252_vm1, %v251_v8, 0 }
  0x17   : > { %v255_v10 = vshrl.u32 %v253_v9, 16  ;;  %v254_v11 = vand.u32 65535, %v253_v9 }
  0x19   : > { %v257_v12 = vcvt.s32.f32 %v255_v10  ;;  %v256_v13 = vcvt.s32.f32 %v254_v11 }
  0x1b   : > { %260 = vadd.xlane.f32.xlu0 %v257_v12 }
  0x1f   : > { %258 = vadd.xlane.f32.xlu0 %v256_v13 }
  0xa4   : > { %v261_v14 = vpop.xlane.xlu0 %260 }
  0xa5   : > { %v263_v15 = vcvt.f32.s32 %v261_v14 }
  0xa7   : > { %v264_v17 = vshll.u32 %v263_v15, 16 }
  0xa8   : > { %v259_v16 = vpop.xlane.xlu0 %258 }
  0xa9   : > { %v262_v18 = vcvt.f32.s32 %v259_v16 }
  0xab   : > { %v265_v19 = vadd.s32 %v264_v17, %v262_v18 }
  0xad   : > { %vm266_vm3 = vcmp.ge.s32.totalorder %v265_v19, 32 }
  0xae   : > { %v267_v21 = vsel %vm266_vm3, 0, %v1416_v20  ;;  %v268_v23 = vsel %vm266_vm3, 1073741823, %v1417_v22 }
  0xaf   : > { %v269_v24 = vsub.s32 %v268_v23, %v267_v21 }
  0xb1   : > { %v270_v25 = vshra.s32 %v269_v24, 1 }
  0xb3   : > { %v271_v26 = vadd.s32 %v270_v25, %v267_v21 }
  0xb5   : > { %vm272_vm4 = vcmp.le.s32.totalorder %v1479_v7, %v271_v26  ;;  %v288_v39 = vadd.s32 1, %v271_v26 }
  0xb6   : > { %v273_v27 = vsel %vm272_vm4, 1, %v1415_v1 }
  0xb7   : > { %v274_v28 = vsel %vm252_vm1, %v273_v27, 0 }
  0xb8   : > { %v276_v29 = vshrl.u32 %v274_v28, 16  ;;  %v275_v31 = vand.u32 65535, %v274_v28 }
  0xba   : > { %v278_v30 = vcvt.s32.f32 %v276_v29  ;;  %v277_v32 = vcvt.s32.f32 %v275_v31 }
  0xbc   : > { %281 = vadd.xlane.f32.xlu1 %v278_v30 }
  0xc0   : > { %279 = vadd.xlane.f32.xlu1 %v277_v32 }
 0x145   : > { %v282_v33 = vpop.xlane.xlu1 %281 }
 0x146   : > { %v284_v34 = vcvt.f32.s32 %v282_v33 }
 0x148   : > { %v285_v36 = vshll.u32 %v284_v34, 16 }
 0x149   : > { %v280_v35 = vpop.xlane.xlu1 %279 }
 0x14a   : > { %v283_v37 = vcvt.f32.s32 %v280_v35 }
 0x14c   : > { %v286_v38 = vadd.s32 %v285_v36, %v283_v37 }
 0x14e   : > { %vm287_vm5 = vcmp.ge.s32.totalorder %v286_v38, 32 }
 0x14f   : > { %v289_v40 = vsel %vm287_vm5, %v267_v21, %v288_v39  ;;  %v290_v41 = vsel %vm287_vm5, %v271_v26, %v268_v23 }
 0x150   : > { %v291_v42 = vsub.s32 %v290_v41, %v289_v40 }
 0x152   : > { %v292_v43 = vshra.s32 %v291_v42, 1 }
 0x154   : > { %v293_v44 = vadd.s32 %v292_v43, %v289_v40 }
 0x156   : > { %vm294_vm6 = vcmp.le.s32.totalorder %v1479_v7, %v293_v44  ;;  %v310_v57 = vadd.s32 1, %v293_v44 }
 0x157   : > { %v295_v45 = vsel %vm294_vm6, 1, %v1415_v1 }
 0x158   : > { %v296_v46 = vsel %vm252_vm1, %v295_v45, 0 }
 0x159   : > { %v298_v47 = vshrl.u32 %v296_v46, 16  ;;  %v297_v48 = vand.u32 65535, %v296_v46 }
 0x15b   : > { %v300_v49 = vcvt.s32.f32 %v298_v47  ;;  %v299_v50 = vcvt.s32.f32 %v297_v48 }
 0x15d   : > { %303 = vadd.xlane.f32.xlu0 %v300_v49  ;;  %301 = vadd.xlane.f32.xlu1 %v299_v50 }
 0x1e6   : > { %v304_v51 = vpop.xlane.xlu0 %303  ;;  %v302_v52 = vpop.xlane.xlu1 %301 }
 0x1e7   : > { %v306_v53 = vcvt.f32.s32 %v304_v51  ;;  %v305_v55 = vcvt.f32.s32 %v302_v52 }
 0x1e9   : > { %v307_v54 = vshll.u32 %v306_v53, 16 }
 0x1eb   : > { %v308_v56 = vadd.s32 %v307_v54, %v305_v55 }
 0x1ed   : > { %vm309_vm7 = vcmp.ge.s32.totalorder %v308_v56, 32 }
 0x1ee   : > { %v311_v58 = vsel %vm309_vm7, %v289_v40, %v310_v57  ;;  %v312_v59 = vsel %vm309_vm7, %v293_v44, %v290_v41 }
 0x1ef   : > { %v313_v60 = vsub.s32 %v312_v59, %v311_v58 }
 0x1f1   : > { %v314_v61 = vshra.s32 %v313_v60, 1 }
 0x1f3   : > { %v315_v62 = vadd.s32 %v314_v61, %v311_v58 }
 0x1f5   : > { %vm316_vm8 = vcmp.le.s32.totalorder %v1479_v7, %v315_v62  ;;  %v332_v15 = vadd.s32 1, %v315_v62 }
 0x1f6   : > { %v317_v63 = vsel %vm316_vm8, 1, %v1415_v1 }
 0x1f7   : > { %v318_v2 = vsel %vm252_vm1, %v317_v63, 0 }
 0x1f8   : > { %v320_v4 = vshrl.u32 %v318_v2, 16  ;;  %v319_v5 = vand.u32 65535, %v318_v2 }
 0x1fa   : > { %v322_v6 = vcvt.s32.f32 %v320_v4  ;;  %v321_v8 = vcvt.s32.f32 %v319_v5 }
 0x1fc   : > { %325 = vadd.xlane.f32.xlu0 %v322_v6  ;;  %323 = vadd.xlane.f32.xlu1 %v321_v8 }
 0x285   : > { %v326_v9 = vpop.xlane.xlu0 %325  ;;  %v324_v10 = vpop.xlane.xlu1 %323 }
 0x286   : > { %v328_v11 = vcvt.f32.s32 %v326_v9  ;;  %v327_v13 = vcvt.f32.s32 %v324_v10 }
 0x288   : > { %v329_v12 = vshll.u32 %v328_v11, 16 }
 0x28a   : > { %v330_v14 = vadd.s32 %v329_v12, %v327_v13 }
 0x28c   : > { %vm331_vm9 = vcmp.ge.s32.totalorder %v330_v14, 32 }
 0x28d   : > { %v333_v16 = vsel %vm331_vm9, %v311_v58, %v332_v15  ;;  %v334_v17 = vsel %vm331_vm9, %v315_v62, %v312_v59 }
 0x28e   : > { %v335_v18 = vsub.s32 %v334_v17, %v333_v16 }
 0x290   : > { %v336_v19 = vshra.s32 %v335_v18, 1 }
 0x292   : > { %v337_v20 = vadd.s32 %v336_v19, %v333_v16 }
 0x294   : > { %vm338_vm10 = vcmp.le.s32.totalorder %v1479_v7, %v337_v20  ;;  %v354_v33 = vadd.s32 1, %v337_v20 }
 0x295   : > { %v339_v21 = vsel %vm338_vm10, 1, %v1415_v1 }
 0x296   : > { %v340_v22 = vsel %vm252_vm1, %v339_v21, 0 }
 0x297   : > { %v342_v23 = vshrl.u32 %v340_v22, 16  ;;  %v341_v24 = vand.u32 65535, %v340_v22 }
 0x299   : > { %v344_v25 = vcvt.s32.f32 %v342_v23  ;;  %v343_v26 = vcvt.s32.f32 %v341_v24 }
 0x29b   : > { %347 = vadd.xlane.f32.xlu0 %v344_v25  ;;  %345 = vadd.xlane.f32.xlu1 %v343_v26 }
 0x324   : > { %v348_v27 = vpop.xlane.xlu0 %347  ;;  %v346_v28 = vpop.xlane.xlu1 %345 }
 0x325   : > { %v350_v29 = vcvt.f32.s32 %v348_v27  ;;  %v349_v31 = vcvt.f32.s32 %v346_v28 }
 0x327   : > { %v351_v30 = vshll.u32 %v350_v29, 16 }
 0x329   : > { %v352_v32 = vadd.s32 %v351_v30, %v349_v31 }
 0x32b   : > { %vm353_vm11 = vcmp.ge.s32.totalorder %v352_v32, 32 }
 0x32c   : > { %v355_v34 = vsel %vm353_vm11, %v333_v16, %v354_v33  ;;  %v356_v35 = vsel %vm353_vm11, %v337_v20, %v334_v17 }
 0x32d   : > { %v357_v36 = vsub.s32 %v356_v35, %v355_v34 }
 0x32f   : > { %v358_v37 = vshra.s32 %v357_v36, 1 }
 0x331   : > { %v359_v38 = vadd.s32 %v358_v37, %v355_v34 }
 0x333   : > { %vm360_vm12 = vcmp.le.s32.totalorder %v1479_v7, %v359_v38  ;;  %v376_v51 = vadd.s32 1, %v359_v38 }
 0x334   : > { %v361_v39 = vsel %vm360_vm12, 1, %v1415_v1 }
 0x335   : > { %v362_v40 = vsel %vm252_vm1, %v361_v39, 0 }
 0x336   : > { %v364_v41 = vshrl.u32 %v362_v40, 16  ;;  %v363_v42 = vand.u32 65535, %v362_v40 }
 0x338   : > { %v366_v43 = vcvt.s32.f32 %v364_v41  ;;  %v365_v44 = vcvt.s32.f32 %v363_v42 }
 0x33a   : > { %369 = vadd.xlane.f32.xlu0 %v366_v43  ;;  %367 = vadd.xlane.f32.xlu1 %v365_v44 }
 0x3c3   : > { %v370_v45 = vpop.xlane.xlu0 %369  ;;  %v368_v46 = vpop.xlane.xlu1 %367 }
 0x3c4   : > { %v372_v47 = vcvt.f32.s32 %v370_v45  ;;  %v371_v49 = vcvt.f32.s32 %v368_v46 }
 0x3c6   : > { %v373_v48 = vshll.u32 %v372_v47, 16 }
 0x3c8   : > { %v374_v50 = vadd.s32 %v373_v48, %v371_v49 }
 0x3ca   : > { %vm375_vm13 = vcmp.ge.s32.totalorder %v374_v50, 32 }
 0x3cb   : > { %v377_v52 = vsel %vm375_vm13, %v355_v34, %v376_v51  ;;  %v378_v53 = vsel %vm375_vm13, %v359_v38, %v356_v35 }
 0x3cc   : > { %v379_v54 = vsub.s32 %v378_v53, %v377_v52 }
 0x3ce   : > { %v380_v55 = vshra.s32 %v379_v54, 1 }
 0x3d0   : > { %v381_v56 = vadd.s32 %v380_v55, %v377_v52 }
 0x3d2   : > { %vm382_vm14 = vcmp.le.s32.totalorder %v1479_v7, %v381_v56  ;;  %v398_v9 = vadd.s32 1, %v381_v56 }
 0x3d3   : > { %v383_v57 = vsel %vm382_vm14, 1, %v1415_v1 }
 0x3d4   : > { %v384_v58 = vsel %vm252_vm1, %v383_v57, 0 }
 0x3d5   : > { %v386_v59 = vshrl.u32 %v384_v58, 16  ;;  %v385_v60 = vand.u32 65535, %v384_v58 }
 0x3d7   : > { %v388_v61 = vcvt.s32.f32 %v386_v59  ;;  %v387_v62 = vcvt.s32.f32 %v385_v60 }
 0x3d9   : > { %391 = vadd.xlane.f32.xlu0 %v388_v61  ;;  %389 = vadd.xlane.f32.xlu1 %v387_v62 }
 0x462   : > { %v392_v63 = vpop.xlane.xlu0 %391  ;;  %v390_v2 = vpop.xlane.xlu1 %389 }
 0x463   : > { %v394_v4 = vcvt.f32.s32 %v392_v63  ;;  %v393_v6 = vcvt.f32.s32 %v390_v2 }
 0x465   : > { %v395_v5 = vshll.u32 %v394_v4, 16 }
 0x467   : > { %v396_v8 = vadd.s32 %v395_v5, %v393_v6 }
 0x469   : > { %vm397_vm15 = vcmp.ge.s32.totalorder %v396_v8, 32 }
 0x46a   : > { %v399_v10 = vsel %vm397_vm15, %v377_v52, %v398_v9  ;;  %v400_v11 = vsel %vm397_vm15, %v381_v56, %v378_v53 }
 0x46b   : > { %v401_v12 = vsub.s32 %v400_v11, %v399_v10 }
 0x46d   : > { %v402_v13 = vshra.s32 %v401_v12, 1 }
 0x46f   : > { %v403_v14 = vadd.s32 %v402_v13, %v399_v10 }
 0x471   : > { %vm404_vm2 = vcmp.le.s32.totalorder %v1479_v7, %v403_v14  ;;  %v420_v27 = vadd.s32 1, %v403_v14 }
 0x472   : > { %v405_v15 = vsel %vm404_vm2, 1, %v1415_v1 }
 0x473   : > { %v406_v16 = vsel %vm252_vm1, %v405_v15, 0 }
 0x474   : > { %v408_v17 = vshrl.u32 %v406_v16, 16  ;;  %v407_v18 = vand.u32 65535, %v406_v16 }
 0x476   : > { %v410_v19 = vcvt.s32.f32 %v408_v17  ;;  %v409_v20 = vcvt.s32.f32 %v407_v18 }
 0x478   : > { %413 = vadd.xlane.f32.xlu0 %v410_v19  ;;  %411 = vadd.xlane.f32.xlu1 %v409_v20 }
 0x501   : > { %v414_v21 = vpop.xlane.xlu0 %413  ;;  %v412_v22 = vpop.xlane.xlu1 %411 }
 0x502   : > { %v416_v23 = vcvt.f32.s32 %v414_v21  ;;  %v415_v25 = vcvt.f32.s32 %v412_v22 }
 0x504   : > { %v417_v24 = vshll.u32 %v416_v23, 16 }
 0x506   : > { %v418_v26 = vadd.s32 %v417_v24, %v415_v25 }
 0x508   : > { %vm419_vm3 = vcmp.ge.s32.totalorder %v418_v26, 32 }
 0x509   : > { %v421_v28 = vsel %vm419_vm3, %v399_v10, %v420_v27  ;;  %v422_v29 = vsel %vm419_vm3, %v403_v14, %v400_v11 }
 0x50a   : > { %v423_v30 = vsub.s32 %v422_v29, %v421_v28 }
 0x50c   : > { %v424_v31 = vshra.s32 %v423_v30, 1 }
 0x50e   : > { %v425_v32 = vadd.s32 %v424_v31, %v421_v28 }
 0x510   : > { %vm426_vm4 = vcmp.le.s32.totalorder %v1479_v7, %v425_v32  ;;  %v442_v45 = vadd.s32 1, %v425_v32 }
 0x511   : > { %v427_v33 = vsel %vm426_vm4, 1, %v1415_v1 }
 0x512   : > { %v428_v34 = vsel %vm252_vm1, %v427_v33, 0 }
 0x513   : > { %v430_v35 = vshrl.u32 %v428_v34, 16  ;;  %v429_v36 = vand.u32 65535, %v428_v34 }
 0x515   : > { %v432_v37 = vcvt.s32.f32 %v430_v35  ;;  %v431_v38 = vcvt.s32.f32 %v429_v36 }
 0x517   : > { %435 = vadd.xlane.f32.xlu0 %v432_v37  ;;  %433 = vadd.xlane.f32.xlu1 %v431_v38 }
 0x5a0   : > { %v436_v39 = vpop.xlane.xlu0 %435  ;;  %v434_v40 = vpop.xlane.xlu1 %433 }
 0x5a1   : > { %v438_v41 = vcvt.f32.s32 %v436_v39  ;;  %v437_v43 = vcvt.f32.s32 %v434_v40 }
 0x5a3   : > { %v439_v42 = vshll.u32 %v438_v41, 16 }
 0x5a5   : > { %v440_v44 = vadd.s32 %v439_v42, %v437_v43 }
 0x5a7   : > { %vm441_vm5 = vcmp.ge.s32.totalorder %v440_v44, 32 }
 0x5a8   : > { %v443_v46 = vsel %vm441_vm5, %v421_v28, %v442_v45  ;;  %v444_v47 = vsel %vm441_vm5, %v425_v32, %v422_v29 }
 0x5a9   : > { %v445_v48 = vsub.s32 %v444_v47, %v443_v46 }
 0x5ab   : > { %v446_v49 = vshra.s32 %v445_v48, 1 }
 0x5ad   : > { %v447_v50 = vadd.s32 %v446_v49, %v443_v46 }
 0x5af   : > { %vm448_vm6 = vcmp.le.s32.totalorder %v1479_v7, %v447_v50  ;;  %v464_v63 = vadd.s32 1, %v447_v50 }
 0x5b0   : > { %v449_v51 = vsel %vm448_vm6, 1, %v1415_v1 }
 0x5b1   : > { %v450_v52 = vsel %vm252_vm1, %v449_v51, 0 }
 0x5b2   : > { %v452_v53 = vshrl.u32 %v450_v52, 16  ;;  %v451_v54 = vand.u32 65535, %v450_v52 }
 0x5b4   : > { %v454_v55 = vcvt.s32.f32 %v452_v53  ;;  %v453_v56 = vcvt.s32.f32 %v451_v54 }
 0x5b6   : > { %457 = vadd.xlane.f32.xlu0 %v454_v55  ;;  %455 = vadd.xlane.f32.xlu1 %v453_v56 }
 0x63f   : > { %v458_v57 = vpop.xlane.xlu0 %457  ;;  %v456_v58 = vpop.xlane.xlu1 %455 }
 0x640   : > { %v460_v59 = vcvt.f32.s32 %v458_v57  ;;  %v459_v61 = vcvt.f32.s32 %v456_v58 }
 0x642   : > { %v461_v60 = vshll.u32 %v460_v59, 16 }
 0x644   : > { %v462_v62 = vadd.s32 %v461_v60, %v459_v61 }
 0x646   : > { %vm463_vm7 = vcmp.ge.s32.totalorder %v462_v62, 32 }
 0x647   : > { %v465_v2 = vsel %vm463_vm7, %v443_v46, %v464_v63  ;;  %v466_v4 = vsel %vm463_vm7, %v447_v50, %v444_v47 }
 0x648   : > { %v467_v5 = vsub.s32 %v466_v4, %v465_v2 }
 0x64a   : > { %v468_v6 = vshra.s32 %v467_v5, 1 }
 0x64c   : > { %v469_v8 = vadd.s32 %v468_v6, %v465_v2 }
 0x64e   : > { %vm470_vm8 = vcmp.le.s32.totalorder %v1479_v7, %v469_v8  ;;  %v486_v21 = vadd.s32 1, %v469_v8 }
 0x64f   : > { %v471_v9 = vsel %vm470_vm8, 1, %v1415_v1 }
 0x650   : > { %v472_v10 = vsel %vm252_vm1, %v471_v9, 0 }
 0x651   : > { %v474_v11 = vshrl.u32 %v472_v10, 16  ;;  %v473_v12 = vand.u32 65535, %v472_v10 }
 0x653   : > { %v476_v13 = vcvt.s32.f32 %v474_v11  ;;  %v475_v14 = vcvt.s32.f32 %v473_v12 }
 0x655   : > { %479 = vadd.xlane.f32.xlu0 %v476_v13  ;;  %477 = vadd.xlane.f32.xlu1 %v475_v14 }
 0x6de   : > { %v480_v15 = vpop.xlane.xlu0 %479  ;;  %v478_v16 = vpop.xlane.xlu1 %477 }
 0x6df   : > { %v482_v17 = vcvt.f32.s32 %v480_v15  ;;  %v481_v19 = vcvt.f32.s32 %v478_v16 }
 0x6e1   : > { %v483_v18 = vshll.u32 %v482_v17, 16 }
 0x6e3   : > { %v484_v20 = vadd.s32 %v483_v18, %v481_v19 }
 0x6e5   : > { %vm485_vm9 = vcmp.ge.s32.totalorder %v484_v20, 32 }
 0x6e6   : > { %v487_v22 = vsel %vm485_vm9, %v465_v2, %v486_v21  ;;  %v488_v23 = vsel %vm485_vm9, %v469_v8, %v466_v4 }
 0x6e7   : > { %v489_v24 = vsub.s32 %v488_v23, %v487_v22 }
 0x6e9   : > { %v490_v25 = vshra.s32 %v489_v24, 1 }
 0x6eb   : > { %v491_v26 = vadd.s32 %v490_v25, %v487_v22 }
 0x6ed   : > { %vm492_vm10 = vcmp.le.s32.totalorder %v1479_v7, %v491_v26  ;;  %v508_v39 = vadd.s32 1, %v491_v26 }
 0x6ee   : > { %v493_v27 = vsel %vm492_vm10, 1, %v1415_v1 }
 0x6ef   : > { %v494_v28 = vsel %vm252_vm1, %v493_v27, 0 }
 0x6f0   : > { %v496_v29 = vshrl.u32 %v494_v28, 16  ;;  %v495_v30 = vand.u32 65535, %v494_v28 }
 0x6f2   : > { %v498_v31 = vcvt.s32.f32 %v496_v29  ;;  %v497_v32 = vcvt.s32.f32 %v495_v30 }
 0x6f4   : > { %501 = vadd.xlane.f32.xlu0 %v498_v31  ;;  %499 = vadd.xlane.f32.xlu1 %v497_v32 }
 0x77d   : > { %v502_v33 = vpop.xlane.xlu0 %501  ;;  %v500_v34 = vpop.xlane.xlu1 %499 }
 0x77e   : > { %v504_v35 = vcvt.f32.s32 %v502_v33  ;;  %v503_v37 = vcvt.f32.s32 %v500_v34 }
 0x780   : > { %v505_v36 = vshll.u32 %v504_v35, 16 }
 0x782   : > { %v506_v38 = vadd.s32 %v505_v36, %v503_v37 }
 0x784   : > { %vm507_vm11 = vcmp.ge.s32.totalorder %v506_v38, 32 }
 0x785   : > { %v509_v40 = vsel %vm507_vm11, %v487_v22, %v508_v39  ;;  %v510_v41 = vsel %vm507_vm11, %v491_v26, %v488_v23 }
 0x786   : > { %v511_v42 = vsub.s32 %v510_v41, %v509_v40 }
 0x788   : > { %v512_v43 = vshra.s32 %v511_v42, 1 }
 0x78a   : > { %v513_v44 = vadd.s32 %v512_v43, %v509_v40 }
 0x78c   : > { %vm514_vm12 = vcmp.le.s32.totalorder %v1479_v7, %v513_v44  ;;  %v530_v57 = vadd.s32 1, %v513_v44 }
 0x78d   : > { %v515_v45 = vsel %vm514_vm12, 1, %v1415_v1 }
 0x78e   : > { %v516_v46 = vsel %vm252_vm1, %v515_v45, 0 }
 0x78f   : > { %v518_v47 = vshrl.u32 %v516_v46, 16  ;;  %v517_v48 = vand.u32 65535, %v516_v46 }
 0x791   : > { %v520_v49 = vcvt.s32.f32 %v518_v47  ;;  %v519_v50 = vcvt.s32.f32 %v517_v48 }
 0x793   : > { %523 = vadd.xlane.f32.xlu0 %v520_v49  ;;  %521 = vadd.xlane.f32.xlu1 %v519_v50 }
 0x81c   : > { %v524_v51 = vpop.xlane.xlu0 %523  ;;  %v522_v52 = vpop.xlane.xlu1 %521 }
 0x81d   : > { %v526_v53 = vcvt.f32.s32 %v524_v51  ;;  %v525_v55 = vcvt.f32.s32 %v522_v52 }
 0x81f   : > { %v527_v54 = vshll.u32 %v526_v53, 16 }
 0x821   : > { %v528_v56 = vadd.s32 %v527_v54, %v525_v55 }
 0x823   : > { %vm529_vm13 = vcmp.ge.s32.totalorder %v528_v56, 32 }
 0x824   : > { %v531_v58 = vsel %vm529_vm13, %v509_v40, %v530_v57  ;;  %v532_v59 = vsel %vm529_vm13, %v513_v44, %v510_v41 }
 0x825   : > { %v533_v60 = vsub.s32 %v532_v59, %v531_v58 }
 0x827   : > { %v534_v61 = vshra.s32 %v533_v60, 1 }
 0x829   : > { %v535_v62 = vadd.s32 %v534_v61, %v531_v58 }
 0x82b   : > { %vm536_vm14 = vcmp.le.s32.totalorder %v1479_v7, %v535_v62  ;;  %v552_v15 = vadd.s32 1, %v535_v62 }
 0x82c   : > { %v537_v63 = vsel %vm536_vm14, 1, %v1415_v1 }
 0x82d   : > { %v538_v2 = vsel %vm252_vm1, %v537_v63, 0 }
 0x82e   : > { %v540_v4 = vshrl.u32 %v538_v2, 16  ;;  %v539_v5 = vand.u32 65535, %v538_v2 }
 0x830   : > { %v542_v6 = vcvt.s32.f32 %v540_v4  ;;  %v541_v8 = vcvt.s32.f32 %v539_v5 }
 0x832   : > { %545 = vadd.xlane.f32.xlu0 %v542_v6  ;;  %543 = vadd.xlane.f32.xlu1 %v541_v8 }
 0x8bb   : > { %v546_v9 = vpop.xlane.xlu0 %545  ;;  %v544_v10 = vpop.xlane.xlu1 %543 }
 0x8bc   : > { %v548_v11 = vcvt.f32.s32 %v546_v9  ;;  %v547_v13 = vcvt.f32.s32 %v544_v10 }
 0x8be   : > { %v549_v12 = vshll.u32 %v548_v11, 16 }
 0x8c0   : > { %v550_v14 = vadd.s32 %v549_v12, %v547_v13 }
 0x8c2   : > { %vm551_vm15 = vcmp.ge.s32.totalorder %v550_v14, 32 }
 0x8c3   : > { %v553_v16 = vsel %vm551_vm15, %v531_v58, %v552_v15  ;;  %v554_v17 = vsel %vm551_vm15, %v535_v62, %v532_v59 }
 0x8c4   : > { %v555_v18 = vsub.s32 %v554_v17, %v553_v16 }
 0x8c6   : > { %v556_v19 = vshra.s32 %v555_v18, 1 }
 0x8c8   : > { %v557_v20 = vadd.s32 %v556_v19, %v553_v16 }
 0x8ca   : > { %vm558_vm2 = vcmp.le.s32.totalorder %v1479_v7, %v557_v20  ;;  %v574_v33 = vadd.s32 1, %v557_v20 }
 0x8cb   : > { %v559_v21 = vsel %vm558_vm2, 1, %v1415_v1 }
 0x8cc   : > { %v560_v22 = vsel %vm252_vm1, %v559_v21, 0 }
 0x8cd   : > { %v562_v23 = vshrl.u32 %v560_v22, 16  ;;  %v561_v24 = vand.u32 65535, %v560_v22 }
 0x8cf   : > { %v564_v25 = vcvt.s32.f32 %v562_v23  ;;  %v563_v26 = vcvt.s32.f32 %v561_v24 }
 0x8d1   : > { %567 = vadd.xlane.f32.xlu0 %v564_v25  ;;  %565 = vadd.xlane.f32.xlu1 %v563_v26 }
 0x95a   : > { %v568_v27 = vpop.xlane.xlu0 %567  ;;  %v566_v28 = vpop.xlane.xlu1 %565 }
 0x95b   : > { %v570_v29 = vcvt.f32.s32 %v568_v27  ;;  %v569_v31 = vcvt.f32.s32 %v566_v28 }
 0x95d   : > { %v571_v30 = vshll.u32 %v570_v29, 16 }
 0x95f   : > { %v572_v32 = vadd.s32 %v571_v30, %v569_v31 }
 0x961   : > { %vm573_vm3 = vcmp.ge.s32.totalorder %v572_v32, 32 }
 0x962   : > { %v575_v34 = vsel %vm573_vm3, %v553_v16, %v574_v33  ;;  %v576_v35 = vsel %vm573_vm3, %v557_v20, %v554_v17 }
 0x963   : > { %v577_v36 = vsub.s32 %v576_v35, %v575_v34 }
 0x965   : > { %v578_v37 = vshra.s32 %v577_v36, 1 }
 0x967   : > { %v579_v38 = vadd.s32 %v578_v37, %v575_v34 }
 0x969   : > { %vm580_vm4 = vcmp.le.s32.totalorder %v1479_v7, %v579_v38  ;;  %v596_v51 = vadd.s32 1, %v579_v38 }
 0x96a   : > { %v581_v39 = vsel %vm580_vm4, 1, %v1415_v1 }
 0x96b   : > { %v582_v40 = vsel %vm252_vm1, %v581_v39, 0 }
 0x96c   : > { %v584_v41 = vshrl.u32 %v582_v40, 16  ;;  %v583_v42 = vand.u32 65535, %v582_v40 }
 0x96e   : > { %v586_v43 = vcvt.s32.f32 %v584_v41  ;;  %v585_v44 = vcvt.s32.f32 %v583_v42 }
 0x970   : > { %589 = vadd.xlane.f32.xlu0 %v586_v43  ;;  %587 = vadd.xlane.f32.xlu1 %v585_v44 }
 0x9f9   : > { %v590_v45 = vpop.xlane.xlu0 %589  ;;  %v588_v46 = vpop.xlane.xlu1 %587 }
 0x9fa   : > { %v592_v47 = vcvt.f32.s32 %v590_v45  ;;  %v591_v49 = vcvt.f32.s32 %v588_v46 }
 0x9fc   : > { %v593_v48 = vshll.u32 %v592_v47, 16 }
 0x9fe   : > { %v594_v50 = vadd.s32 %v593_v48, %v591_v49 }
 0xa00   : > { %vm595_vm5 = vcmp.ge.s32.totalorder %v594_v50, 32 }
 0xa01   : > { %v597_v52 = vsel %vm595_vm5, %v575_v34, %v596_v51  ;;  %v598_v53 = vsel %vm595_vm5, %v579_v38, %v576_v35 }
 0xa02   : > { %v599_v54 = vsub.s32 %v598_v53, %v597_v52 }
 0xa04   : > { %v600_v55 = vshra.s32 %v599_v54, 1 }
 0xa06   : > { %v601_v56 = vadd.s32 %v600_v55, %v597_v52 }
 0xa08   : > { %vm602_vm6 = vcmp.le.s32.totalorder %v1479_v7, %v601_v56  ;;  %v618_v9 = vadd.s32 1, %v601_v56 }
 0xa09   : > { %v603_v57 = vsel %vm602_vm6, 1, %v1415_v1 }
 0xa0a   : > { %v604_v58 = vsel %vm252_vm1, %v603_v57, 0 }
 0xa0b   : > { %v606_v59 = vshrl.u32 %v604_v58, 16  ;;  %v605_v60 = vand.u32 65535, %v604_v58 }
 0xa0d   : > { %v608_v61 = vcvt.s32.f32 %v606_v59  ;;  %v607_v62 = vcvt.s32.f32 %v605_v60 }
 0xa0f   : > { %611 = vadd.xlane.f32.xlu0 %v608_v61  ;;  %609 = vadd.xlane.f32.xlu1 %v607_v62 }
 0xa98   : > { %v612_v63 = vpop.xlane.xlu0 %611  ;;  %v610_v2 = vpop.xlane.xlu1 %609 }
 0xa99   : > { %v614_v4 = vcvt.f32.s32 %v612_v63  ;;  %v613_v6 = vcvt.f32.s32 %v610_v2 }
 0xa9b   : > { %v615_v5 = vshll.u32 %v614_v4, 16 }
 0xa9d   : > { %v616_v8 = vadd.s32 %v615_v5, %v613_v6 }
 0xa9f   : > { %vm617_vm7 = vcmp.ge.s32.totalorder %v616_v8, 32 }
 0xaa0   : > { %v619_v10 = vsel %vm617_vm7, %v597_v52, %v618_v9  ;;  %v620_v11 = vsel %vm617_vm7, %v601_v56, %v598_v53 }
 0xaa1   : > { %v621_v12 = vsub.s32 %v620_v11, %v619_v10 }
 0xaa3   : > { %v622_v13 = vshra.s32 %v621_v12, 1 }
 0xaa5   : > { %v623_v14 = vadd.s32 %v622_v13, %v619_v10 }
 0xaa7   : > { %vm624_vm8 = vcmp.le.s32.totalorder %v1479_v7, %v623_v14  ;;  %v640_v27 = vadd.s32 1, %v623_v14 }
 0xaa8   : > { %v625_v15 = vsel %vm624_vm8, 1, %v1415_v1 }
 0xaa9   : > { %v626_v16 = vsel %vm252_vm1, %v625_v15, 0 }
 0xaaa   : > { %v628_v17 = vshrl.u32 %v626_v16, 16  ;;  %v627_v18 = vand.u32 65535, %v626_v16 }
 0xaac   : > { %v630_v19 = vcvt.s32.f32 %v628_v17  ;;  %v629_v20 = vcvt.s32.f32 %v627_v18 }
 0xaae   : > { %633 = vadd.xlane.f32.xlu0 %v630_v19  ;;  %631 = vadd.xlane.f32.xlu1 %v629_v20 }
 0xb37   : > { %v634_v21 = vpop.xlane.xlu0 %633  ;;  %v632_v22 = vpop.xlane.xlu1 %631 }
 0xb38   : > { %v636_v23 = vcvt.f32.s32 %v634_v21  ;;  %v635_v25 = vcvt.f32.s32 %v632_v22 }
 0xb3a   : > { %v637_v24 = vshll.u32 %v636_v23, 16 }
 0xb3c   : > { %v638_v26 = vadd.s32 %v637_v24, %v635_v25 }
 0xb3e   : > { %vm639_vm9 = vcmp.ge.s32.totalorder %v638_v26, 32 }
 0xb3f   : > { %v641_v28 = vsel %vm639_vm9, %v619_v10, %v640_v27  ;;  %v642_v29 = vsel %vm639_vm9, %v623_v14, %v620_v11 }
 0xb40   : > { %v643_v30 = vsub.s32 %v642_v29, %v641_v28 }
 0xb42   : > { %v644_v31 = vshra.s32 %v643_v30, 1 }
 0xb44   : > { %v645_v32 = vadd.s32 %v644_v31, %v641_v28 }
 0xb46   : > { %vm646_vm10 = vcmp.le.s32.totalorder %v1479_v7, %v645_v32  ;;  %v662_v45 = vadd.s32 1, %v645_v32 }
 0xb47   : > { %v647_v33 = vsel %vm646_vm10, 1, %v1415_v1 }
 0xb48   : > { %v648_v34 = vsel %vm252_vm1, %v647_v33, 0 }
 0xb49   : > { %v650_v35 = vshrl.u32 %v648_v34, 16  ;;  %v649_v36 = vand.u32 65535, %v648_v34 }
 0xb4b   : > { %v652_v37 = vcvt.s32.f32 %v650_v35  ;;  %v651_v38 = vcvt.s32.f32 %v649_v36 }
 0xb4d   : > { %655 = vadd.xlane.f32.xlu0 %v652_v37  ;;  %653 = vadd.xlane.f32.xlu1 %v651_v38 }
 0xbd6   : > { %v656_v39 = vpop.xlane.xlu0 %655  ;;  %v654_v40 = vpop.xlane.xlu1 %653 }
 0xbd7   : > { %v658_v41 = vcvt.f32.s32 %v656_v39  ;;  %v657_v43 = vcvt.f32.s32 %v654_v40 }
 0xbd9   : > { %v659_v42 = vshll.u32 %v658_v41, 16 }
 0xbdb   : > { %v660_v44 = vadd.s32 %v659_v42, %v657_v43 }
 0xbdd   : > { %vm661_vm11 = vcmp.ge.s32.totalorder %v660_v44, 32 }
 0xbde   : > { %v663_v46 = vsel %vm661_vm11, %v641_v28, %v662_v45  ;;  %v664_v47 = vsel %vm661_vm11, %v645_v32, %v642_v29 }
 0xbdf   : > { %v665_v48 = vsub.s32 %v664_v47, %v663_v46 }
 0xbe1   : > { %v666_v49 = vshra.s32 %v665_v48, 1 }
 0xbe3   : > { %v667_v50 = vadd.s32 %v666_v49, %v663_v46 }
 0xbe5   : > { %vm668_vm12 = vcmp.le.s32.totalorder %v1479_v7, %v667_v50  ;;  %v684_v63 = vadd.s32 1, %v667_v50 }
 0xbe6   : > { %v669_v51 = vsel %vm668_vm12, 1, %v1415_v1 }
 0xbe7   : > { %v670_v52 = vsel %vm252_vm1, %v669_v51, 0 }
 0xbe8   : > { %v672_v53 = vshrl.u32 %v670_v52, 16  ;;  %v671_v54 = vand.u32 65535, %v670_v52 }
 0xbea   : > { %v674_v55 = vcvt.s32.f32 %v672_v53  ;;  %v673_v56 = vcvt.s32.f32 %v671_v54 }
 0xbec   : > { %677 = vadd.xlane.f32.xlu0 %v674_v55  ;;  %675 = vadd.xlane.f32.xlu1 %v673_v56 }
 0xc75   : > { %v678_v57 = vpop.xlane.xlu0 %677  ;;  %v676_v58 = vpop.xlane.xlu1 %675 }
 0xc76   : > { %v680_v59 = vcvt.f32.s32 %v678_v57  ;;  %v679_v61 = vcvt.f32.s32 %v676_v58 }
 0xc78   : > { %v681_v60 = vshll.u32 %v680_v59, 16 }
 0xc7a   : > { %v682_v62 = vadd.s32 %v681_v60, %v679_v61 }
 0xc7c   : > { %vm683_vm13 = vcmp.ge.s32.totalorder %v682_v62, 32 }
 0xc7d   : > { %v685_v2 = vsel %vm683_vm13, %v663_v46, %v684_v63  ;;  %v686_v4 = vsel %vm683_vm13, %v667_v50, %v664_v47 }
 0xc7e   : > { %v687_v5 = vsub.s32 %v686_v4, %v685_v2 }
 0xc80   : > { %v688_v6 = vshra.s32 %v687_v5, 1 }
 0xc82   : > { %v689_v8 = vadd.s32 %v688_v6, %v685_v2 }
 0xc84   : > { %vm690_vm14 = vcmp.le.s32.totalorder %v1479_v7, %v689_v8  ;;  %v706_v21 = vadd.s32 1, %v689_v8 }
 0xc85   : > { %v691_v9 = vsel %vm690_vm14, 1, %v1415_v1 }
 0xc86   : > { %v692_v10 = vsel %vm252_vm1, %v691_v9, 0 }
 0xc87   : > { %v694_v11 = vshrl.u32 %v692_v10, 16  ;;  %v693_v12 = vand.u32 65535, %v692_v10 }
 0xc89   : > { %v696_v13 = vcvt.s32.f32 %v694_v11  ;;  %v695_v14 = vcvt.s32.f32 %v693_v12 }
 0xc8b   : > { %699 = vadd.xlane.f32.xlu0 %v696_v13  ;;  %697 = vadd.xlane.f32.xlu1 %v695_v14 }
 0xd14   : > { %v700_v15 = vpop.xlane.xlu0 %699  ;;  %v698_v16 = vpop.xlane.xlu1 %697 }
 0xd15   : > { %v702_v17 = vcvt.f32.s32 %v700_v15  ;;  %v701_v19 = vcvt.f32.s32 %v698_v16 }
 0xd17   : > { %v703_v18 = vshll.u32 %v702_v17, 16 }
 0xd19   : > { %v704_v20 = vadd.s32 %v703_v18, %v701_v19 }
 0xd1b   : > { %vm705_vm15 = vcmp.ge.s32.totalorder %v704_v20, 32 }
 0xd1c   : > { %v707_v22 = vsel %vm705_vm15, %v685_v2, %v706_v21  ;;  %v708_v23 = vsel %vm705_vm15, %v689_v8, %v686_v4 }
 0xd1d   : > { %v709_v24 = vsub.s32 %v708_v23, %v707_v22 }
 0xd1f   : > { %v710_v25 = vshra.s32 %v709_v24, 1 }
 0xd21   : > { %v711_v26 = vadd.s32 %v710_v25, %v707_v22 }
 0xd23   : > { %vm712_vm2 = vcmp.le.s32.totalorder %v1479_v7, %v711_v26  ;;  %v728_v39 = vadd.s32 1, %v711_v26 }
 0xd24   : > { %v713_v27 = vsel %vm712_vm2, 1, %v1415_v1 }
 0xd25   : > { %v714_v28 = vsel %vm252_vm1, %v713_v27, 0 }
 0xd26   : > { %v716_v29 = vshrl.u32 %v714_v28, 16  ;;  %v715_v30 = vand.u32 65535, %v714_v28 }
 0xd28   : > { %v718_v31 = vcvt.s32.f32 %v716_v29  ;;  %v717_v32 = vcvt.s32.f32 %v715_v30 }
 0xd2a   : > { %721 = vadd.xlane.f32.xlu0 %v718_v31  ;;  %719 = vadd.xlane.f32.xlu1 %v717_v32 }
 0xdb3   : > { %v722_v33 = vpop.xlane.xlu0 %721  ;;  %v720_v34 = vpop.xlane.xlu1 %719 }
 0xdb4   : > { %v724_v35 = vcvt.f32.s32 %v722_v33  ;;  %v723_v37 = vcvt.f32.s32 %v720_v34 }
 0xdb6   : > { %v725_v36 = vshll.u32 %v724_v35, 16 }
 0xdb8   : > { %v726_v38 = vadd.s32 %v725_v36, %v723_v37 }
 0xdba   : > { %vm727_vm3 = vcmp.ge.s32.totalorder %v726_v38, 32 }
 0xdbb   : > { %v729_v40 = vsel %vm727_vm3, %v707_v22, %v728_v39  ;;  %v730_v41 = vsel %vm727_vm3, %v711_v26, %v708_v23 }
 0xdbc   : > { %v731_v42 = vsub.s32 %v730_v41, %v729_v40 }
 0xdbe   : > { %v732_v43 = vshra.s32 %v731_v42, 1 }
 0xdc0   : > { %v733_v44 = vadd.s32 %v732_v43, %v729_v40 }
 0xdc2   : > { %vm734_vm4 = vcmp.le.s32.totalorder %v1479_v7, %v733_v44  ;;  %v750_v57 = vadd.s32 1, %v733_v44 }
 0xdc3   : > { %v735_v45 = vsel %vm734_vm4, 1, %v1415_v1 }
 0xdc4   : > { %v736_v46 = vsel %vm252_vm1, %v735_v45, 0 }
 0xdc5   : > { %v738_v47 = vshrl.u32 %v736_v46, 16  ;;  %v737_v48 = vand.u32 65535, %v736_v46 }
 0xdc7   : > { %v740_v49 = vcvt.s32.f32 %v738_v47  ;;  %v739_v50 = vcvt.s32.f32 %v737_v48 }
 0xdc9   : > { %743 = vadd.xlane.f32.xlu0 %v740_v49  ;;  %741 = vadd.xlane.f32.xlu1 %v739_v50 }
 0xe52   : > { %v744_v51 = vpop.xlane.xlu0 %743  ;;  %v742_v52 = vpop.xlane.xlu1 %741 }
 0xe53   : > { %v746_v53 = vcvt.f32.s32 %v744_v51  ;;  %v745_v55 = vcvt.f32.s32 %v742_v52 }
 0xe55   : > { %v747_v54 = vshll.u32 %v746_v53, 16 }
 0xe57   : > { %v748_v56 = vadd.s32 %v747_v54, %v745_v55 }
 0xe59   : > { %vm749_vm5 = vcmp.ge.s32.totalorder %v748_v56, 32 }
 0xe5a   : > { %v751_v58 = vsel %vm749_vm5, %v729_v40, %v750_v57  ;;  %v752_v59 = vsel %vm749_vm5, %v733_v44, %v730_v41 }
 0xe5b   : > { %v753_v60 = vsub.s32 %v752_v59, %v751_v58 }
 0xe5d   : > { %v754_v61 = vshra.s32 %v753_v60, 1 }
 0xe5f   : > { %v755_v62 = vadd.s32 %v754_v61, %v751_v58 }
 0xe61   : > { %vm756_vm6 = vcmp.le.s32.totalorder %v1479_v7, %v755_v62  ;;  %v772_v15 = vadd.s32 1, %v755_v62 }
 0xe62   : > { %v757_v63 = vsel %vm756_vm6, 1, %v1415_v1 }
 0xe63   : > { %v758_v2 = vsel %vm252_vm1, %v757_v63, 0 }
 0xe64   : > { %v760_v4 = vshrl.u32 %v758_v2, 16  ;;  %v759_v5 = vand.u32 65535, %v758_v2 }
 0xe66   : > { %v762_v6 = vcvt.s32.f32 %v760_v4  ;;  %v761_v8 = vcvt.s32.f32 %v759_v5 }
 0xe68   : > { %765 = vadd.xlane.f32.xlu0 %v762_v6  ;;  %763 = vadd.xlane.f32.xlu1 %v761_v8 }
 0xef1   : > { %v766_v9 = vpop.xlane.xlu0 %765  ;;  %v764_v10 = vpop.xlane.xlu1 %763 }
 0xef2   : > { %v768_v11 = vcvt.f32.s32 %v766_v9  ;;  %v767_v13 = vcvt.f32.s32 %v764_v10 }
 0xef4   : > { %v769_v12 = vshll.u32 %v768_v11, 16 }
 0xef6   : > { %v770_v14 = vadd.s32 %v769_v12, %v767_v13 }
 0xef8   : > { %vm771_vm7 = vcmp.ge.s32.totalorder %v770_v14, 32 }
 0xef9   : > { %v773_v16 = vsel %vm771_vm7, %v751_v58, %v772_v15  ;;  %v774_v17 = vsel %vm771_vm7, %v755_v62, %v752_v59 }
 0xefa   : > { %v775_v18 = vsub.s32 %v774_v17, %v773_v16 }
 0xefc   : > { %v776_v19 = vshra.s32 %v775_v18, 1 }
 0xefe   : > { %v777_v20 = vadd.s32 %v776_v19, %v773_v16 }
 0xf00   : > { %vm778_vm8 = vcmp.le.s32.totalorder %v1479_v7, %v777_v20  ;;  %v794_v33 = vadd.s32 1, %v777_v20 }
 0xf01   : > { %v779_v21 = vsel %vm778_vm8, 1, %v1415_v1 }
 0xf02   : > { %v780_v22 = vsel %vm252_vm1, %v779_v21, 0 }
 0xf03   : > { %v782_v23 = vshrl.u32 %v780_v22, 16  ;;  %v781_v24 = vand.u32 65535, %v780_v22 }
 0xf05   : > { %v784_v25 = vcvt.s32.f32 %v782_v23  ;;  %v783_v26 = vcvt.s32.f32 %v781_v24 }
 0xf07   : > { %787 = vadd.xlane.f32.xlu0 %v784_v25  ;;  %785 = vadd.xlane.f32.xlu1 %v783_v26 }
 0xf90   : > { %v788_v27 = vpop.xlane.xlu0 %787  ;;  %v786_v28 = vpop.xlane.xlu1 %785 }
 0xf91   : > { %v790_v29 = vcvt.f32.s32 %v788_v27  ;;  %v789_v31 = vcvt.f32.s32 %v786_v28 }
 0xf93   : > { %v791_v30 = vshll.u32 %v790_v29, 16 }
 0xf95   : > { %v792_v32 = vadd.s32 %v791_v30, %v789_v31 }
 0xf97   : > { %vm793_vm9 = vcmp.ge.s32.totalorder %v792_v32, 32 }
 0xf98   : > { %v795_v34 = vsel %vm793_vm9, %v773_v16, %v794_v33  ;;  %v796_v35 = vsel %vm793_vm9, %v777_v20, %v774_v17 }
 0xf99   : > { %v797_v36 = vsub.s32 %v796_v35, %v795_v34 }
 0xf9b   : > { %v798_v37 = vshra.s32 %v797_v36, 1 }
 0xf9d   : > { %v799_v38 = vadd.s32 %v798_v37, %v795_v34 }
 0xf9f   : > { %vm800_vm10 = vcmp.le.s32.totalorder %v1479_v7, %v799_v38  ;;  %v816_v51 = vadd.s32 1, %v799_v38 }
 0xfa0   : > { %v801_v39 = vsel %vm800_vm10, 1, %v1415_v1 }
 0xfa1   : > { %v802_v40 = vsel %vm252_vm1, %v801_v39, 0 }
 0xfa2   : > { %v804_v41 = vshrl.u32 %v802_v40, 16  ;;  %v803_v42 = vand.u32 65535, %v802_v40 }
 0xfa4   : > { %v806_v43 = vcvt.s32.f32 %v804_v41  ;;  %v805_v44 = vcvt.s32.f32 %v803_v42 }
 0xfa6   : > { %809 = vadd.xlane.f32.xlu0 %v806_v43  ;;  %807 = vadd.xlane.f32.xlu1 %v805_v44 }
0x102f   : > { %v810_v45 = vpop.xlane.xlu0 %809  ;;  %v808_v46 = vpop.xlane.xlu1 %807 }
0x1030   : > { %v812_v47 = vcvt.f32.s32 %v810_v45  ;;  %v811_v49 = vcvt.f32.s32 %v808_v46 }
0x1032   : > { %v813_v48 = vshll.u32 %v812_v47, 16 }
0x1034   : > { %v814_v50 = vadd.s32 %v813_v48, %v811_v49 }
0x1036   : > { %vm815_vm11 = vcmp.ge.s32.totalorder %v814_v50, 32 }
0x1037   : > { %v817_v52 = vsel %vm815_vm11, %v795_v34, %v816_v51  ;;  %v818_v53 = vsel %vm815_vm11, %v799_v38, %v796_v35  ;;  %vm958_vm11 = vcmask 7168  }
0x1038   : > { %v819_v54 = vsub.s32 %v818_v53, %v817_v52 }
0x103a   : > { %v820_v55 = vshra.s32 %v819_v54, 1 }
0x103c   : > { %v821_v56 = vadd.s32 %v820_v55, %v817_v52 }
0x103e   : > { %vm822_vm12 = vcmp.le.s32.totalorder %v1479_v7, %v821_v56  ;;  %v838_v9 = vadd.s32 1, %v821_v56 }
0x103f   : > { %v823_v57 = vsel %vm822_vm12, 1, %v1415_v1  ;;  %vm976_vm12 = vcmask 31744  }
0x1040   : > { %v824_v58 = vsel %vm252_vm1, %v823_v57, 0 }
0x1041   : > { %v826_v59 = vshrl.u32 %v824_v58, 16  ;;  %v825_v60 = vand.u32 65535, %v824_v58 }
0x1043   : > { %v828_v61 = vcvt.s32.f32 %v826_v59  ;;  %v827_v62 = vcvt.s32.f32 %v825_v60 }
0x1045   : > { %831 = vadd.xlane.f32.xlu0 %v828_v61  ;;  %829 = vadd.xlane.f32.xlu1 %v827_v62 }
0x10ce   : > { %v832_v63 = vpop.xlane.xlu0 %831  ;;  %v830_v2 = vpop.xlane.xlu1 %829 }
0x10cf   : > { %v834_v4 = vcvt.f32.s32 %v832_v63  ;;  %v833_v6 = vcvt.f32.s32 %v830_v2 }
0x10d1   : > { %v835_v5 = vshll.u32 %v834_v4, 16 }
0x10d3   : > { %v836_v8 = vadd.s32 %v835_v5, %v833_v6 }
0x10d5   : > { %vm837_vm13 = vcmp.ge.s32.totalorder %v836_v8, 32 }
0x10d6   : > { %v839_v10 = vsel %vm837_vm13, %v817_v52, %v838_v9  ;;  %v840_v11 = vsel %vm837_vm13, %v821_v56, %v818_v53  ;;  %vm985_vm13 = vcmask 64512  }
0x10d7   : > { %v841_v12 = vsub.s32 %v840_v11, %v839_v10 }
0x10d9   : > { %v842_v13 = vshra.s32 %v841_v12, 1 }
0x10db   : > { %v843_v14 = vadd.s32 %v842_v13, %v839_v10 }
0x10dd   : > { %vm844_vm14 = vcmp.le.s32.totalorder %v1479_v7, %v843_v14  ;;  %v860_v27 = vadd.s32 1, %v843_v14 }
0x10de   : > { %v845_v15 = vsel %vm844_vm14, 1, %v1415_v1  ;;  %vm994_vm14 = vcmask 130048  }
0x10df   : > { %v846_v16 = vsel %vm252_vm1, %v845_v15, 0 }
0x10e0   : > { %v848_v17 = vshrl.u32 %v846_v16, 16  ;;  %v847_v18 = vand.u32 65535, %v846_v16 }
0x10e2   : > { %v850_v19 = vcvt.s32.f32 %v848_v17  ;;  %v849_v20 = vcvt.s32.f32 %v847_v18 }
0x10e4   : > { %853 = vadd.xlane.f32.xlu0 %v850_v19  ;;  %851 = vadd.xlane.f32.xlu1 %v849_v20 }
0x116d   : > { %v854_v21 = vpop.xlane.xlu0 %853  ;;  %v852_v22 = vpop.xlane.xlu1 %851 }
0x116e   : > { %v856_v23 = vcvt.f32.s32 %v854_v21  ;;  %v855_v25 = vcvt.f32.s32 %v852_v22 }
0x1170   : > { %v857_v24 = vshll.u32 %v856_v23, 16 }
0x1172   : > { %v858_v26 = vadd.s32 %v857_v24, %v855_v25 }
0x1174   : > { %vm859_vm15 = vcmp.ge.s32.totalorder %v858_v26, 32 }
0x1175   : > { %v861_v28 = vsel %vm859_vm15, %v839_v10, %v860_v27  ;;  %v862_v29 = vsel %vm859_vm15, %v843_v14, %v840_v11  ;;  %vm1003_vm15 = vcmask 261120  }
0x1176   : > { %v863_v30 = vsub.s32 %v862_v29, %v861_v28 }
0x1178   : > { %v864_v31 = vshra.s32 %v863_v30, 1 }
0x117a   : > { %v865_v32 = vadd.s32 %v864_v31, %v861_v28 }
0x117c   : > { %vm866_vm2 = vcmp.le.s32.totalorder %v1479_v7, %v865_v32  ;;  %v882_v45 = vadd.s32 1, %v865_v32 }
0x117d   : > { %v867_v33 = vsel %vm866_vm2, 1, %v1415_v1  ;;  %vm1426_vm2 = vmmov 0  }
0x117e   : > { %v868_v34 = vsel %vm252_vm1, %v867_v33, 0 }
0x117f   : > { %v870_v35 = vshrl.u32 %v868_v34, 16  ;;  %v869_v36 = vand.u32 65535, %v868_v34 }
0x1181   : > { %v872_v37 = vcvt.s32.f32 %v870_v35  ;;  %v871_v38 = vcvt.s32.f32 %v869_v36 }
0x1183   : > { %875 = vadd.xlane.f32.xlu0 %v872_v37  ;;  %873 = vadd.xlane.f32.xlu1 %v871_v38  ;;  %v953_v38 = vshrl.u32 %v244_v0, 7 }
0x120c   : > { %v876_v39 = vpop.xlane.xlu0 %875  ;;  %v874_v40 = vpop.xlane.xlu1 %873 }
0x120d   : > { %v878_v41 = vcvt.f32.s32 %v876_v39  ;;  %v877_v43 = vcvt.f32.s32 %v874_v40 }
0x120f   : > { %v879_v42 = vshll.u32 %v878_v41, 16  ;;  %v1578_v41 = vsub.s32 0, %v953_v38 }
0x1211   : > { %v880_v44 = vadd.s32 %v879_v42, %v877_v43 }
0x1213   : > { %vm881_vm3 = vcmp.ge.s32.totalorder %v880_v44, 32 }
0x1214   : > { %v883_v46 = vsel %vm881_vm3, %v861_v28, %v882_v45  ;;  %v884_v47 = vsel %vm881_vm3, %v865_v32, %v862_v29  ;;  %vm1012_vm3 = vcmask 523264  }
0x1215   : > { %v885_v48 = vsub.s32 %v884_v47, %v883_v46 }
0x1217   : > { %v886_v49 = vshra.s32 %v885_v48, 1 }
0x1219   : > { %v887_v50 = vadd.s32 %v886_v49, %v883_v46 }
0x121b   : > { %vm888_vm4 = vcmp.le.s32.totalorder %v1479_v7, %v887_v50  ;;  %v904_v63 = vadd.s32 1, %v887_v50 }
0x121c   : > { %v889_v51 = vsel %vm888_vm4, 1, %v1415_v1 }
0x121d   : > { %v890_v52 = vsel %vm252_vm1, %v889_v51, 0 }
0x121e   : > { %v892_v53 = vshrl.u32 %v890_v52, 16  ;;  %v891_v54 = vand.u32 65535, %v890_v52 }
0x1220   : > { %v894_v55 = vcvt.s32.f32 %v892_v53  ;;  %v893_v56 = vcvt.s32.f32 %v891_v54 }
0x1222   : > { %897 = vadd.xlane.f32.xlu0 %v894_v55  ;;  %895 = vadd.xlane.f32.xlu1 %v893_v56 }
0x12ab   : > { %v898_v57 = vpop.xlane.xlu0 %897  ;;  %v896_v58 = vpop.xlane.xlu1 %895 }
0x12ac   : > { %v900_v59 = vcvt.f32.s32 %v898_v57  ;;  %v899_v61 = vcvt.f32.s32 %v896_v58 }
0x12ae   : > { %v901_v60 = vshll.u32 %v900_v59, 16 }
0x12b0   : > { %v902_v62 = vadd.s32 %v901_v60, %v899_v61  ;;  %v1032_v61 = vld [vmem:[%s1600_s5 + $0x78] sm:$0xff] }
0x12b2   : > { %vm903_vm5 = vcmp.ge.s32.totalorder %v902_v62, 32  ;;  %v1030_v62 = vld [vmem:[%s1600_s5 + $0x68] sm:$0xff] }
0x12b3   : > { %v905_v2 = vsel %vm903_vm5, %v883_v46, %v904_v63  ;;  %v906_v4 = vsel %vm903_vm5, %v887_v50, %v884_v47  ;;  %v1029_v63 = vld [vmem:[%s1600_s5 + $0x60] sm:$0xff] }
0x12b4   : > { %v907_v5 = vsub.s32 %v906_v4, %v905_v2 }
0x12b6   : > { %v908_v6 = vshra.s32 %v907_v5, 1  ;;  %v1023_v5 = vld [vmem:[%s1600_s5 + $0x30] sm:$0xff] }
0x12b8   : > { %v909_v8 = vadd.s32 %v908_v6, %v905_v2  ;;  %v1021_v6 = vld [vmem:[%s1600_s5 + $0x20] sm:$0xff] }
0x12ba   : > { %vm910_vm6 = vcmp.le.s32.totalorder %v1479_v7, %v909_v8  ;;  %v926_v21 = vadd.s32 1, %v909_v8 }
0x12bb   : > { %v911_v9 = vsel %vm910_vm6, 1, %v1415_v1 }
0x12bc   : > { %v912_v10 = vsel %vm252_vm1, %v911_v9, 0  ;;  %v1017_v9 = vld [vmem:[%s1600_s5] sm:$0xff] }
0x12bd   : > { %v914_v11 = vshrl.u32 %v912_v10, 16  ;;  %v913_v12 = vand.u32 65535, %v912_v10 }
0x12bf   : > { %v916_v13 = vcvt.s32.f32 %v914_v11  ;;  %v915_v14 = vcvt.s32.f32 %v913_v12  ;;  %v1424_v12 = vmov 0.0  }
0x12c0   : > { %1349 = vmatprep.subr.mxu0 %v1424_v12  ;;  %1381 = vmatprep.mubr.msk.f32.mxu0 %vm1426_vm2, %v1424_v12 }
0x12c1   : > { %919 = vadd.xlane.f32.xlu0 %v916_v13  ;;  %917 = vadd.xlane.f32.xlu1 %v915_v14 }
0x134a   : > { %v920_v15 = vpop.xlane.xlu0 %919  ;;  %v918_v16 = vpop.xlane.xlu1 %917 }
0x134b   : > { %v922_v17 = vcvt.f32.s32 %v920_v15  ;;  %v921_v19 = vcvt.f32.s32 %v918_v16  ;;  %v1031_v15 = vld [vmem:[%s1600_s5 + $0x70] sm:$0xff]  ;;  %v1028_v16 = vld [vmem:[%s1600_s5 + $0x58] sm:$0xff] }
0x134d   : > { %v923_v18 = vshll.u32 %v922_v17, 16  ;;  %v1026_v17 = vld [vmem:[%s1600_s5 + $0x48] sm:$0xff] }
0x134f   : > { %v924_v20 = vadd.s32 %v923_v18, %v921_v19  ;;  %v1024_v18 = vld [vmem:[%s1600_s5 + $0x38] sm:$0xff]  ;;  %v1022_v19 = vld [vmem:[%s1600_s5 + $0x28] sm:$0xff] }
0x1351   : > { %vm925_vm7 = vcmp.ge.s32.totalorder %v924_v20, 32  ;;  %v1020_v20 = vld [vmem:[%s1600_s5 + $0x18] sm:$0xff] }
0x1352   : > { %v927_v22 = vsel %vm925_vm7, %v905_v2, %v926_v21  ;;  %v928_v23 = vsel %vm925_vm7, %v909_v8, %v906_v4  ;;  %v1027_v2 = vld [vmem:[%s1600_s5 + $0x50] sm:$0xff]  ;;  %v1025_v4 = vld [vmem:[%s1600_s5 + $0x40] sm:$0xff]  ;;  %v1018_v21 = vld [vmem:[%s1600_s5 + $0x8] sm:$0xff] }
0x1353   : > { %v929_v24 = vsub.s32 %v928_v23, %v927_v22  ;;  %v1019_v8 = vld [vmem:[%s1600_s5 + $0x10] sm:$0xff] }
0x1355   : > { %v930_v25 = vshra.s32 %v929_v24, 1 }
0x1357   : > { %v931_v26 = vadd.s32 %v930_v25, %v927_v22 }
0x1359   : > { %vm932_vm8 = vcmp.le.s32.totalorder %v1479_v7, %v931_v26 }
0x135a   : > { %v933_v27 = vsel %vm932_vm8, 1, %v1415_v1 }
0x135b   : > { %v934_v28 = vsel %vm252_vm1, %v933_v27, 0 }
0x135c   : > { %v936_v29 = vshrl.u32 %v934_v28, 16  ;;  %v935_v30 = vand.u32 65535, %v934_v28 }
0x135e   : > { %v938_v31 = vcvt.s32.f32 %v936_v29  ;;  %v937_v32 = vcvt.s32.f32 %v935_v30  ;;  %v1427_v29 = vmov 1.0  }
0x1360   : > { %941 = vadd.xlane.f32.xlu0 %v938_v31  ;;  %939 = vadd.xlane.f32.xlu1 %v937_v32 }
0x13e9   : > { %v942_v33 = vpop.xlane.xlu0 %941  ;;  %v940_v34 = vpop.xlane.xlu1 %939 }
0x13ea   : > { %v944_v35 = vcvt.f32.s32 %v942_v33  ;;  %v943_v37 = vcvt.f32.s32 %v940_v34 }
0x13ec   : > { %v945_v36 = vshll.u32 %v944_v35, 16 }
0x13ee   : > { %v946_v39 = vadd.s32 %v945_v36, %v943_v37 }
0x13f0   : > { %vm947_vm9 = vcmp.ge.s32.totalorder %v946_v39, 32 }
0x13f1   : > { %v948_v40 = vsel %vm947_vm9, %v931_v26, %v928_v23 }
0x13f2   : > { %vm949_vm1 = vcmp.le.s32.totalorder %v1479_v7, %v948_v40 }
0x13f3   : > { %vm1583_vm10 = vmand %vm949_vm1, %vm243_vm0  ;;  %vm967_vm0 = vcmask 15360  }
0x13f4   : > { %v951_v43 = vsel %vm1583_vm10, 1, %v1415_v1 }
0x13f5   : > { %v955_v44 = vrot.slane %v951_v43, %v1578_v41 }
0x13f7   : > { %956 = vrot.lane.b32.xlu0 %v955_v44, %s1418_s23 }
0x1469   : > { %v957_v0 = vpop.permute.xlu0 %956 }
0x146a   : > { %v959_v45 = vsel %vm958_vm11, 0, %v957_v0  ;;  %v241_v0 = vld [vmem:[%s225_s11] sm:$0x7] }
0x146b   : > { %v960_v46 = vadd.s32 %v959_v45, %v951_v43 }
0x146d   : > { %v964_v7 = vrot.slane %v960_v46, %v1578_v41 }
0x146f   : > { %965 = vrot.lane.b32.xlu1 %v964_v7, %s1419_s24 }
0x14e1   : > { %v966_v3 = vpop.permute.xlu1 %965 }
0x14e2   : > { %v968_v47 = vsel %vm967_vm0, 0, %v966_v3 }
0x14e3   : > { %v969_v48 = vadd.s32 %v968_v47, %v960_v46 }
0x14e5   : > { %v973_v49 = vrot.slane %v969_v48, %v1578_v41 }
0x14e7   : > { %974 = vrot.lane.b32.xlu1 %v973_v49, %s1420_s25 }
0x1559   : > { %v975_v1 = vpop.permute.xlu1 %974 }
0x155a   : > { %v977_v50 = vsel %vm976_vm12, 0, %v975_v1 }
0x155b   : > { %v978_v51 = vadd.s32 %v977_v50, %v969_v48 }
0x155d   : > { %v982_v52 = vrot.slane %v978_v51, %v1578_v41 }
0x155f   : > { %983 = vrot.lane.b32.xlu1 %v982_v52, %s1421_s26 }
0x15d1   : > { %v984_v53 = vpop.permute.xlu1 %983 }
0x15d2   : > { %v986_v54 = vsel %vm985_vm13, 0, %v984_v53 }
0x15d3   : > { %v987_v55 = vadd.s32 %v986_v54, %v978_v51 }
0x15d5   : > { %v991_v56 = vrot.slane %v987_v55, %v1578_v41 }
0x15d7   : > { %992 = vrot.lane.b32.xlu0 %v991_v56, %s1422_s27 }
0x1649   : > { %v993_v57 = vpop.permute.xlu0 %992 }
0x164a   : > { %v995_v58 = vsel %vm994_vm14, 0, %v993_v57 }
0x164b   : > { %v996_v59 = vadd.s32 %v995_v58, %v987_v55 }
0x164d   : > { %v1000_v60 = vrot.slane %v996_v59, %v1578_v41 }
0x164f   : > { %1001 = vrot.lane.b32.xlu1 %v1000_v60, %s1423_s6 }
0x1653   : > { %1079 = vperm.xlu1 %1405, %v1032_v61  }
0x1657   : > { %1073 = vperm.xlu1 %1405, %v1030_v62  }
0x165b   : > { %1070 = vperm.xlu1 %1405, %v1029_v63  }
0x165f   : > { %1064 = vperm.xlu1 %1405, %v1027_v2  }
0x1663   : > { %1058 = vperm.xlu1 %1405, %v1025_v4  }
0x1667   : > { %1052 = vperm.xlu1 %1405, %v1023_v5  }
0x166b   : > { %1046 = vperm.xlu1 %1405, %v1021_v6  }
0x166f   : > { %1040 = vperm.xlu1 %1405, %v1019_v8  }
0x1673   : > { %1034 = vperm.xlu1 %1405, %v1017_v9  }
0x16c1   : > { %v1002_v10 = vpop.permute.xlu1 %1001 }
0x16c2   : > { %v1004_v11 = vsel %vm1003_vm15, 0, %v1002_v10 }
0x16c3   : > { %v1005_v13 = vadd.s32 %v1004_v11, %v996_v59 }
0x16c5   : > { %v1009_v14 = vrot.slane %v1005_v13, %v1578_v41 }
0x16c7   : > { %1010 = vrot.lane.b32.xlu0 %v1009_v14, %s1425_s7 }
0x16cb   : > { %1076 = vperm.xlu0 %1406, %v1031_v15  }
0x16ce   : > { %v1080_v28 = vpop.permute.xlu1 %1079 }
0x16cf   : > { %1067 = vperm.xlu0 %1406, %v1028_v16  }
0x16d2   : > { %v1074_v31 = vpop.permute.xlu1 %1073 }
0x16d3   : > { %1061 = vperm.xlu0 %1406, %v1026_v17  }
0x16d6   : > { %v1071_v32 = vpop.permute.xlu1 %1070 }
0x16d7   : > { %1055 = vperm.xlu0 %1406, %v1024_v18  }
0x16da   : > { %v1065_v34 = vpop.permute.xlu1 %1064 }
0x16db   : > { %1049 = vperm.xlu0 %1406, %v1022_v19  }
0x16de   : > { %v1059_v36 = vpop.permute.xlu1 %1058 }
0x16df   : > { %1043 = vperm.xlu0 %1406, %v1020_v20  }
0x16e2   : > { %v1053_v38 = vpop.permute.xlu1 %1052 }
0x16e3   : > { %1037 = vperm.xlu0 %1406, %v1018_v21  }
0x16e6   : > { %v1047_v40 = vpop.permute.xlu1 %1046 }
0x16ea   : > { %v1041_v42 = vpop.permute.xlu1 %1040 }
0x16ee   : > { %v1035_v44 = vpop.permute.xlu1 %1034 }
0x1739   : > { %v1011_v22 = vpop.permute.xlu0 %1010 }
0x173a   : > { %v1013_v23 = vsel %vm1012_vm3, 0, %v1011_v22 }
0x173b   : > { %v1014_v24 = vadd.s32 %v1013_v23, %v1005_v13 }
0x173d   : > { %v1296_v25 = vadd.s32 4294967295, %v1014_v24 }
0x173f   : > { %v1016_v26 = vsel %vm1583_vm10, %v1296_v25, 4294967295 }
0x1740   : > { %v1624_v27 = vrot.slane %v1016_v26, %v1578_v41 }
0x1742   : > { %vm1100_vm4 = vcmp.eq.s32.totalorder %v1080_v28, %v1624_v27  ;;  %vm1098_vm6 = vcmp.eq.s32.totalorder %v1074_v31, %v1624_v27  ;;  %vm1097_vm7 = vcmp.eq.s32.totalorder %v1071_v32, %v1624_v27  ;;  %vm1095_vm9 = vcmp.eq.s32.totalorder %v1065_v34, %v1624_v27 }
0x1743   : > { %1350 = vmatpush3.xpose.msk.msra.mxu0 %vm1100_vm4, %v1427_v29  ;;  %vm1093_vm10 = vcmp.eq.s32.totalorder %v1059_v36, %v1624_v27  ;;  %vm1091_vm0 = vcmp.eq.s32.totalorder %v1053_v38, %v1624_v27  ;;  %vm1089_vm13 = vcmp.eq.s32.totalorder %v1047_v40, %v1624_v27  ;;  %vm1087_vm15 = vcmp.eq.s32.totalorder %v1041_v42, %v1624_v27 }
0x1744   : > { %1351 = vmatprep.subr.mxu0 %v1424_v12  ;;  %vm1085_vm3 = vcmp.eq.s32.totalorder %v1035_v44, %v1624_v27 }
0x1746   : > { %v1077_v30 = vpop.permute.xlu0 %1076 }
0x1747   : > { %vm1099_vm5 = vcmp.eq.s32.totalorder %v1077_v30, %v1624_v27 }
0x1748   : > { %1352 = vmatpush3.xpose.msk.msra.mxu0 %vm1099_vm5, %v1427_v29 }
0x1749   : > { %1353 = vmatprep.subr.mxu0 %v1424_v12 }
0x174a   : > { %v1068_v33 = vpop.permute.xlu0 %1067 }
0x174b   : > { %vm1096_vm8 = vcmp.eq.s32.totalorder %v1068_v33, %v1624_v27 }
0x174c   : > { %1354 = vmatpush3.xpose.msk.msra.mxu0 %vm1098_vm6, %v1427_v29 }
0x174d   : > { %1355 = vmatprep.subr.mxu0 %v1424_v12 }
0x174e   : > { %v1062_v35 = vpop.permute.xlu0 %1061 }
0x174f   : > { %vm1094_vm1 = vcmp.eq.s32.totalorder %v1062_v35, %v1624_v27 }
0x1750   : > { %1356 = vmatpush3.xpose.msk.msra.mxu0 %vm1097_vm7, %v1427_v29 }
0x1751   : > { %1357 = vmatprep.subr.mxu0 %v1424_v12 }
0x1752   : > { %v1056_v37 = vpop.permute.xlu0 %1055 }
0x1753   : > { %vm1092_vm11 = vcmp.eq.s32.totalorder %v1056_v37, %v1624_v27 }
0x1754   : > { %1358 = vmatpush3.xpose.msk.msra.mxu0 %vm1096_vm8, %v1427_v29 }
0x1755   : > { %1359 = vmatprep.subr.mxu0 %v1424_v12 }
0x1756   : > { %v1050_v39 = vpop.permute.xlu0 %1049 }
0x1757   : > { %vm1090_vm12 = vcmp.eq.s32.totalorder %v1050_v39, %v1624_v27 }
0x1758   : > { %1360 = vmatpush3.xpose.msk.msra.mxu0 %vm1095_vm9, %v1427_v29 }
0x1759   : > { %1361 = vmatprep.subr.mxu0 %v1424_v12 }
0x175a   : > { %v1044_v41 = vpop.permute.xlu0 %1043 }
0x175b   : > { %vm1088_vm14 = vcmp.eq.s32.totalorder %v1044_v41, %v1624_v27 }
0x175c   : > { %1362 = vmatpush3.xpose.msk.msra.mxu0 %vm1094_vm1, %v1427_v29 }
0x175d   : > { %1363 = vmatprep.subr.mxu0 %v1424_v12 }
0x175e   : > { %v1038_v43 = vpop.permute.xlu0 %1037 }
0x175f   : > { %vm1086_vm2 = vcmp.eq.s32.totalorder %v1038_v43, %v1624_v27 }
0x1760   : > { %1364 = vmatpush3.xpose.msk.msra.mxu0 %vm1093_vm10, %v1427_v29 }
0x1761   : > { %1365 = vmatprep.subr.mxu0 %v1424_v12 }
0x1764   : > { %1366 = vmatpush3.xpose.msk.msra.mxu0 %vm1092_vm11, %v1427_v29 }
0x1765   : > { %1367 = vmatprep.subr.mxu0 %v1424_v12 }
0x1768   : > { %1368 = vmatpush3.xpose.msk.msra.mxu0 %vm1091_vm0, %v1427_v29 }
0x1769   : > { %1369 = vmatprep.subr.mxu0 %v1424_v12 }
0x176c   : > { %1370 = vmatpush3.xpose.msk.msra.mxu0 %vm1090_vm12, %v1427_v29 }
0x176d   : > { %1371 = vmatprep.subr.mxu0 %v1424_v12 }
0x1770   : > { %1372 = vmatpush3.xpose.msk.msra.mxu0 %vm1089_vm13, %v1427_v29 }
0x1771   : > { %1373 = vmatprep.subr.mxu0 %v1424_v12 }
0x1774   : > { %1374 = vmatpush3.xpose.msk.msra.mxu0 %vm1088_vm14, %v1427_v29 }
0x1775   : > { %1375 = vmatprep.subr.mxu0 %v1424_v12 }
0x1778   : > { %1376 = vmatpush3.xpose.msk.msra.mxu0 %vm1087_vm15, %v1427_v29 }
0x1779   : > { %1377 = vmatprep.subr.mxu0 %v1424_v12 }
0x177c   : > { %1378 = vmatpush3.xpose.msk.msra.mxu0 %vm1086_vm2, %v1427_v29 }
0x177d   : > { %1379 = vmatprep.subr.mxu0 %v1424_v12 }
0x1780   : > { %1380 = vmatpush3.xpose.msk.msra.mxu0 %vm1085_vm3, %v1427_v29 }
0x1783   : > { %1382 = vmatmul.mubr.f32.vlgmr.msra.gmra.mxu0 %v241_v0 }
0x1843   : > { %v1199_v45 = vpop.f32.mrf.mxu0 }
0x1844   : > { %1203 = vst [vmem:[%s240_s14] sm:$0x7] %v1199_v45 }
0x1845   : > { %v1383_v46 = vpop.f32.mrf.mxu0 }
0x1846 PF: > { %s14_s15 = sadd.s32 1, %s1413_s15  }
0x1847   : > { %p11_p4 = scmp.ge.s32.totalorder %s14_s15, 4  }
0x1849   :  { %13 = sbr.rel (!%p11_p4) target bundleno = 1 (0x1), region = 75 }

</bundles_post_ra>
